<compile_context>
chip_gen: v7x
topology: tpu7x:2x2x1
jax: 0.10.0
libtpu: 0.0.40
codegen_flags: <defaults>
</compile_context>

<pallas_src>
import math
import functools

import jax
import jax.numpy as jnp
from jax.experimental import pallas as pl
from jax.experimental.pallas import tpu as pltpu

_NEG = -1e9


# ----------------------------------------------------------------------------
# Kernel
# ----------------------------------------------------------------------------
def _decoder_layer_kernel(x_ref, enc_ref, smask_ref, cmask_ref,
                          ln_ref, attn_w_ref, attn_b_ref,
                          w1_ref, b1_ref, w2_ref, b2_ref,
                          out_ref, *, num_heads, head_dim):
    H, dh = num_heads, head_dim
    eps = 1e-6

    x = x_ref[...]        # (M,  E)   M  = L*N, rows ordered (l, n)
    enc = enc_ref[...]    # (Mk, E)   Mk = S*N, rows ordered (s, n)
    ln = ln_ref[...]      # (6,  E)   [g1, b1, g2, b2, g3, b3]

    def layer_norm(v, idx):
        g = ln[2 * idx:2 * idx + 1]         # (1, E)
        b = ln[2 * idx + 1:2 * idx + 2]     # (1, E)
        mu = jnp.mean(v, axis=-1, keepdims=True)
        c = v - mu
        var = jnp.mean(c * c, axis=-1, keepdims=True)
        return c * jax.lax.rsqrt(var + eps) * g + b

    def split_heads(t):
        # (M, E) -> (H, M, dh) via static lane slices + leading-dim stack.
        return jnp.stack([t[:, h * dh:(h + 1) * dh] for h in range(H)], axis=0)

    def merge_heads(t):
        # (H, M, dh) -> (M, H*dh) via lane concat (head order preserved).
        return jnp.concatenate([t[h] for h in range(H)], axis=-1)

    def mha(q_in, kv_in, a, mask):
        # Packed weights: attn_w[a] = [wq(pre-scaled), wk, wv, wo], each (E, E)
        #                 attn_b[a] = [bq(pre-scaled), bk, bv, bo], each (E,)
        w = attn_w_ref[a]                   # (4, E, E)
        b = attn_b_ref[a]                   # (4, E)

        # Fused full-E projections (full MXU column utilization, no broadcast).
        q = jnp.dot(q_in, w[0], preferred_element_type=jnp.float32) + b[0:1]
        k = jnp.dot(kv_in, w[1], preferred_element_type=jnp.float32) + b[1:2]
        v = jnp.dot(kv_in, w[2], preferred_element_type=jnp.float32) + b[2:3]

        qh, kh, vh = split_heads(q), split_heads(k), split_heads(v)   # (H, M, dh)

        s = jnp.einsum('hmd,hkd->hmk', qh, kh,
                       preferred_element_type=jnp.float32) + mask     # (H, M, Mk)
        s = s - jnp.max(s, axis=-1, keepdims=True)
        p = jnp.exp(s)
        p = p * pl.reciprocal(jnp.sum(p, axis=-1, keepdims=True), approx=True)

        o = jnp.einsum('hmk,hkd->hmd', p, vh,
                       preferred_element_type=jnp.float32)            # (H, M, dh)
        o = merge_heads(o)                                            # (M, E)
        # Single fused output projection (replaces per-head matmul + head-sum).
        return jnp.dot(o, w[3], preferred_element_type=jnp.float32) + b[3:4]

    # --- self attention block ---
    y = layer_norm(x, 0)
    x = x + mha(y, y, 0, smask_ref[...])

    # --- encoder-decoder (cross) attention block ---
    y = layer_norm(x, 1)
    x = x + mha(y, enc, 1, cmask_ref[...])

    # --- feed-forward block (weights pre-transposed) ---
    y = layer_norm(x, 2)
    h = jnp.dot(y, w1_ref[...], preferred_element_type=jnp.float32) + b1_ref[...]
    h = jnp.maximum(h, 0.0)
    y = jnp.dot(h, w2_ref[...], preferred_element_type=jnp.float32) + b2_ref[...]
    x = x + y

    out_ref[...] = x.astype(out_ref.dtype)


# ----------------------------------------------------------------------------
# Wrapper-side preprocessing
# ----------------------------------------------------------------------------
def _expand_mask(user_mask, n_batch):
    """Expand an (Lq, Lk) additive mask to the flattened (Lq*N, Lk*N) token
    axis (rows/cols ordered (l, n)), masking cross-batch pairs with -1e9."""
    lq, lk = user_mask.shape
    m = jnp.repeat(jnp.repeat(user_mask, n_batch, axis=0), n_batch, axis=1)
    bq = jnp.arange(lq * n_batch) % n_batch
    bk = jnp.arange(lk * n_batch) % n_batch
    same = bq[:, None] == bk[None, :]
    return jnp.where(same, m, _NEG).astype(jnp.float32)


def prepare_params(params, num_heads, embed_dim):
    """Convert PyTorch-layout params into a few packed kernel arrays (one-time
    XLA work: transpose, scale, stack)."""
    E = embed_dim
    dh = E // num_heads
    scale = 1.0 / math.sqrt(dh)
    (ln1w, ln1b, sa_iw, sa_ib, sa_ow, sa_ob,
     ln2w, ln2b, ca_iw, ca_ib, ca_ow, ca_ob,
     ln3w, ln3b, w1, b1, w2, b2) = params

    def attn_pack(iw, ib, ow, ob):
        # iw: (3E, E), ib: (1, 3E), ow: (E, E), ob: (1, E)  (PyTorch layouts)
        wq = iw[0:E].T * scale            # fold 1/sqrt(dh) into q
        wk = iw[E:2 * E].T
        wv = iw[2 * E:3 * E].T
        wo = ow.T
        bq = ib[0, 0:E] * scale
        bk = ib[0, E:2 * E]
        bv = ib[0, 2 * E:3 * E]
        bo = ob[0]
        return (jnp.stack([wq, wk, wv, wo], axis=0),     # (4, E, E)
                jnp.stack([bq, bk, bv, bo], axis=0))     # (4, E)

    sa_w, sa_b = attn_pack(sa_iw, sa_ib, sa_ow, sa_ob)
    ca_w, ca_b = attn_pack(ca_iw, ca_ib, ca_ow, ca_ob)
    attn_w = jnp.stack([sa_w, ca_w], axis=0)             # (2, 4, E, E)
    attn_b = jnp.stack([sa_b, ca_b], axis=0)             # (2, 4, E)

    ln_p = jnp.stack([ln1w[0], ln1b[0], ln2w[0], ln2b[0], ln3w[0], ln3b[0]],
                     axis=0)                              # (6, E)

    return [ln_p, attn_w, attn_b, w1.T, b1, w2.T, b2]


# ----------------------------------------------------------------------------
# Wrapper
# ----------------------------------------------------------------------------
def decoder_layer(x_lne, enc_sne, self_mask, i_mask, params, num_heads):
    """x_lne: (L, N, E); enc_sne: (S, N, E); masks are additive float (L,L)/(L,S)."""
    L, N, E = x_lne.shape
    S = enc_sne.shape[0]
    dh = E // num_heads

    # free, contiguous reshapes — no wrapper transposes, no extra HBM traffic
    x2d = x_lne.reshape(L * N, E)
    enc2d = enc_sne.reshape(S * N, E)

    smask = _expand_mask(self_mask, N)    # (L*N, L*N)
    cmask = _expand_mask(i_mask, N)       # (L*N, S*N)

    kparams = prepare_params(params, num_heads, E)
    inputs = [x2d, enc2d, smask, cmask] + kparams

    def fullspec(shape):
        zeros = (0,) * len(shape)
        return pl.BlockSpec(shape, lambda i, z=zeros: z)

    kernel = functools.partial(_decoder_layer_kernel,
                               num_heads=num_heads, head_dim=dh)

    out = pl.pallas_call(
        kernel,
        out_shape=jax.ShapeDtypeStruct((L * N, E), x_lne.dtype),
        grid=(1,),
        in_specs=[fullspec(a.shape) for a in inputs],
        out_specs=fullspec((L * N, E)),
        compiler_params=pltpu.CompilerParams(
            dimension_semantics=("parallel",)),
    )(*inputs)

    return out.reshape(L, N, E)


# ----------------------------------------------------------------------------
# Pure-JAX reference (PyTorch semantics, eval mode)
# ----------------------------------------------------------------------------
def decoder_layer_ref(x, enc, self_mask, i_mask, params, num_heads):
    (ln1w, ln1b, sa_iw, sa_ib, sa_ow, sa_ob,
     ln2w, ln2b, ca_iw, ca_ib, ca_ow, ca_ob,
     ln3w, ln3b, w1, b1, w2, b2) = params
    E = x.shape[-1]
    H = num_heads
    dh = E // H

    def ln(v, w, b):
        mu = jnp.mean(v, -1, keepdims=True)
        var = jnp.mean((v - mu) ** 2, -1, keepdims=True)
        return (v - mu) / jnp.sqrt(var + 1e-6) * w + b

    def mha(q_in, kv_in, iw, ib, ow, ob, mask):
        q = q_in @ iw[:E].T + ib[:, :E]
        k = kv_in @ iw[E:2 * E].T + ib[:, E:2 * E]
        v = kv_in @ iw[2 * E:].T + ib[:, 2 * E:]
        Lq, N = q.shape[0], q.shape[1]
        Lk = k.shape[0]
        q = q.reshape(Lq, N, H, dh).transpose(1, 2, 0, 3)
        k = k.reshape(Lk, N, H, dh).transpose(1, 2, 0, 3)
        v = v.reshape(Lk, N, H, dh).transpose(1, 2, 0, 3)
        s = q @ jnp.swapaxes(k, -1, -2) / math.sqrt(dh) + mask
        p = jax.nn.softmax(s, axis=-1)
        o = (p @ v).transpose(2, 0, 1, 3).reshape(Lq, N, E)
        return o @ ow.T + ob

    y = ln(x, ln1w, ln1b)
    x = x + mha(y, y, sa_iw, sa_ib, sa_ow, sa_ob, self_mask)
    y = ln(x, ln2w, ln2b)
    x = x + mha(y, enc, ca_iw, ca_ib, ca_ow, ca_ob, i_mask)
    y = ln(x, ln3w, ln3b)
    h = jnp.maximum(y @ w1.T + b1, 0.0)
    return x + (h @ w2.T + b2)


# ----------------------------------------------------------------------------
# Deterministic parameter init (mirrors module __init__ shapes, PyTorch layout)
# ----------------------------------------------------------------------------
def _xavier_uniform(key, shape):
    fan_out, fan_in = shape
    bound = math.sqrt(6.0 / (fan_in + fan_out))
    return jax.random.uniform(key, shape, jnp.float32, -bound, bound)


def make_params(key, embed_dim):
    E = embed_dim
    ks = jax.random.split(key, 8)
    return [
        jnp.ones((1, E), jnp.float32),                 # ln1 weight
        jnp.zeros((1, E), jnp.float32),                # ln1 bias
        _xavier_uniform(ks[0], (3 * E, E)),            # self-attn in_proj_weight
        jnp.zeros((1, 3 * E), jnp.float32),            # self-attn in_proj_bias
        _xavier_uniform(ks[1], (E, E)),                # self-attn out_proj.weight
        jnp.zeros((1, E), jnp.float32),                # self-attn out_proj.bias
        jnp.ones((1, E), jnp.float32),                 # ln2 weight
        jnp.zeros((1, E), jnp.float32),                # ln2 bias
        _xavier_uniform(ks[2], (3 * E, E)),            # cross-attn in_proj_weight
        jnp.zeros((1, 3 * E), jnp.float32),            # cross-attn in_proj_bias
        _xavier_uniform(ks[3], (E, E)),                # cross-attn out_proj.weight
        jnp.zeros((1, E), jnp.float32),                # cross-attn out_proj.bias
        jnp.ones((1, E), jnp.float32),                 # ln3 weight
        jnp.zeros((1, E), jnp.float32),                # ln3 bias
        _xavier_uniform(ks[4], (4 * E, E)),            # ffn layer1 weight
        jnp.zeros((1, 4 * E), jnp.float32),            # ffn layer1 bias
        _xavier_uniform(ks[5], (E, 4 * E)),            # ffn layer2 weight
        jnp.zeros((1, E), jnp.float32),                # ffn layer2 bias
    ]


# ----------------------------------------------------------------------------
# Main
# ----------------------------------------------------------------------------
if __name__ == "__main__":
    L, S, N, E, H = 8, 8, 2, 32, 4   # tgt-seq, src-seq, batch, embed, heads

    key = jax.random.PRNGKey(0)
    kx, kenc, kp = jax.random.split(key, 3)

    x = jax.random.normal(kx, (L, N, E), jnp.float32)             # (L, N, E)
    enc_output = jax.random.normal(kenc, (S, N, E), jnp.float32)  # (S, N, E)

    # additive float attention masks (PyTorch float attn_mask semantics)
    self_mask = jnp.triu(jnp.ones((L, L), jnp.float32), k=1) * _NEG  # causal
    i_mask = jnp.zeros((L, S), jnp.float32)

    params = make_params(kp, E)

    out = decoder_layer(x, enc_output, self_mask, i_mask, params, H)
    out = jax.block_until_ready(out)

    ref = decoder_layer_ref(x, enc_output, self_mask, i_mask, params, H)

    assert out.shape == (L, N, E)
    assert jnp.all(jnp.isfinite(out))
    max_err = float(jnp.max(jnp.abs(out - ref)))
    assert max_err < 5e-2, f"max abs error vs reference: {max_err}"
    print("KERNEL_OK")
</pallas_src>

<mosaic_0001>
module attributes {stable_mosaic.version = 11 : i64} {
  func.func @_decoder_layer_kernel(%arg0: i32, %arg1: memref<16x32xf32, #tpu.memory_space<vmem>>, %arg2: memref<16x32xf32, #tpu.memory_space<vmem>>, %arg3: memref<16x16xf32, #tpu.memory_space<vmem>>, %arg4: memref<16x16xf32, #tpu.memory_space<vmem>>, %arg5: memref<6x32xf32, #tpu.memory_space<vmem>>, %arg6: memref<2x4x32x32xf32, #tpu.memory_space<vmem>>, %arg7: memref<2x4x32xf32, #tpu.memory_space<vmem>>, %arg8: memref<32x128xf32, #tpu.memory_space<vmem>>, %arg9: memref<1x128xf32, #tpu.memory_space<vmem>>, %arg10: memref<128x32xf32, #tpu.memory_space<vmem>>, %arg11: memref<1x32xf32, #tpu.memory_space<vmem>>, %arg12: memref<16x32xf32, #tpu.memory_space<vmem>>) attributes {dimension_semantics = [#tpu.dimension_semantics<parallel>], iteration_bounds = array<i64: 1>, scalar_prefetch = 0 : i64, scratch_operands = 0 : i64, tpu.core_type = #tpu.core_type<tc>, window_params = [{pipeline_mode = #tpu.pipeline_mode<synchronous>, transform_indices = @transform_0, window_bounds = array<i64: 16, 32>}, {pipeline_mode = #tpu.pipeline_mode<synchronous>, transform_indices = @transform_1, window_bounds = array<i64: 16, 32>}, {pipeline_mode = #tpu.pipeline_mode<synchronous>, transform_indices = @transform_2, window_bounds = array<i64: 16, 16>}, {pipeline_mode = #tpu.pipeline_mode<synchronous>, transform_indices = @transform_3, window_bounds = array<i64: 16, 16>}, {pipeline_mode = #tpu.pipeline_mode<synchronous>, transform_indices = @transform_4, window_bounds = array<i64: 6, 32>}, {pipeline_mode = #tpu.pipeline_mode<synchronous>, transform_indices = @transform_5, window_bounds = array<i64: 2, 4, 32, 32>}, {pipeline_mode = #tpu.pipeline_mode<synchronous>, transform_indices = @transform_6, window_bounds = array<i64: 2, 4, 32>}, {pipeline_mode = #tpu.pipeline_mode<synchronous>, transform_indices = @transform_7, window_bounds = array<i64: 32, 128>}, {pipeline_mode = #tpu.pipeline_mode<synchronous>, transform_indices = @transform_8, window_bounds = array<i64: 1, 128>}, {pipeline_mode = #tpu.pipeline_mode<synchronous>, transform_indices = @transform_9, window_bounds = array<i64: 128, 32>}, {pipeline_mode = #tpu.pipeline_mode<synchronous>, transform_indices = @transform_10, window_bounds = array<i64: 1, 32>}, {pipeline_mode = #tpu.pipeline_mode<synchronous>, transform_indices = @transform_11, window_bounds = array<i64: 16, 32>}]} {
    %c0 = arith.constant 0 : index
    %c0_0 = arith.constant 0 : index
    %0 = vector.load %arg1[%c0, %c0_0] : memref<16x32xf32, #tpu.memory_space<vmem>>, vector<16x32xf32>
    %c0_1 = arith.constant 0 : index
    %c0_2 = arith.constant 0 : index
    %1 = vector.load %arg2[%c0_1, %c0_2] : memref<16x32xf32, #tpu.memory_space<vmem>>, vector<16x32xf32>
    %c0_3 = arith.constant 0 : index
    %c0_4 = arith.constant 0 : index
    %2 = vector.load %arg5[%c0_3, %c0_4] : memref<6x32xf32, #tpu.memory_space<vmem>>, vector<6x32xf32>
    %3 = vector.extract_strided_slice %2 {offsets = [0, 0], sizes = [1, 32], strides = [1, 1]} : vector<6x32xf32> to vector<1x32xf32>
    %4 = vector.extract_strided_slice %2 {offsets = [1, 0], sizes = [1, 32], strides = [1, 1]} : vector<6x32xf32> to vector<1x32xf32>
    %cst = arith.constant dense<0.000000e+00> : vector<16xf32>
    %5 = vector.multi_reduction <add>, %0, %cst [1] : vector<16x32xf32> to vector<16xf32>
    %6 = vector.shape_cast %5 : vector<16xf32> to vector<16x1xf32>
    %cst_5 = arith.constant 3.200000e+01 : f32
    %7 = vector.broadcast %cst_5 : f32 to vector<16x1xf32>
    %8 = arith.divf %6, %7 : vector<16x1xf32>
    %9 = vector.broadcast %8 : vector<16x1xf32> to vector<16x32xf32>
    %10 = arith.subf %0, %9 : vector<16x32xf32>
    %11 = arith.mulf %10, %10 : vector<16x32xf32>
    %cst_6 = arith.constant dense<0.000000e+00> : vector<16xf32>
    %12 = vector.multi_reduction <add>, %11, %cst_6 [1] : vector<16x32xf32> to vector<16xf32>
    %13 = vector.shape_cast %12 : vector<16xf32> to vector<16x1xf32>
    %cst_7 = arith.constant 3.200000e+01 : f32
    %14 = vector.broadcast %cst_7 : f32 to vector<16x1xf32>
    %15 = arith.divf %13, %14 : vector<16x1xf32>
    %cst_8 = arith.constant 9.99999997E-7 : f32
    %16 = vector.broadcast %cst_8 : f32 to vector<16x1xf32>
    %17 = arith.addf %15, %16 : vector<16x1xf32>
    %18 = math.rsqrt %17 : vector<16x1xf32>
    %19 = vector.broadcast %18 : vector<16x1xf32> to vector<16x32xf32>
    %20 = arith.mulf %10, %19 : vector<16x32xf32>
    %21 = vector.broadcast %3 : vector<1x32xf32> to vector<16x32xf32>
    %22 = arith.mulf %20, %21 : vector<16x32xf32>
    %23 = vector.broadcast %4 : vector<1x32xf32> to vector<16x32xf32>
    %24 = arith.addf %22, %23 : vector<16x32xf32>
    %c0_9 = arith.constant 0 : index
    %c0_10 = arith.constant 0 : index
    %25 = vector.load %arg3[%c0_9, %c0_10] : memref<16x16xf32, #tpu.memory_space<vmem>>, vector<16x16xf32>
    %c0_11 = arith.constant 0 : index
    %c0_12 = arith.constant 0 : index
    %c0_13 = arith.constant 0 : index
    %c0_14 = arith.constant 0 : index
    %26 = vector.load %arg6[%c0_11, %c0_12, %c0_13, %c0_14] : memref<2x4x32x32xf32, #tpu.memory_space<vmem>>, vector<1x4x32x32xf32>
    %27 = vector.shape_cast %26 : vector<1x4x32x32xf32> to vector<4x32x32xf32>
    %c0_15 = arith.constant 0 : index
    %c0_16 = arith.constant 0 : index
    %c0_17 = arith.constant 0 : index
    %28 = vector.load %arg7[%c0_15, %c0_16, %c0_17] : memref<2x4x32xf32, #tpu.memory_space<vmem>>, vector<1x4x32xf32>
    %29 = vector.shape_cast %28 : vector<1x4x32xf32> to vector<4x32xf32>
    %30 = vector.extract_strided_slice %27 {offsets = [0, 0, 0], sizes = [1, 32, 32], strides = [1, 1, 1]} : vector<4x32x32xf32> to vector<1x32x32xf32>
    %31 = vector.shape_cast %30 : vector<1x32x32xf32> to vector<32x32xf32>
    %cst_18 = arith.constant dense<0.000000e+00> : vector<16x32xf32>
    %32 = tpu.matmul %24, %31, %cst_18 {dimension_numbers = #tpu.dot_dimension_numbers<[1], [0], [0], [1], [0, 0, 1, 1], [], []>} : vector<16x32xf32>, vector<32x32xf32>, vector<16x32xf32> -> vector<16x32xf32>
    %33 = vector.extract_strided_slice %29 {offsets = [0, 0], sizes = [1, 32], strides = [1, 1]} : vector<4x32xf32> to vector<1x32xf32>
    %34 = vector.broadcast %33 : vector<1x32xf32> to vector<16x32xf32>
    %35 = arith.addf %32, %34 : vector<16x32xf32>
    %36 = vector.extract_strided_slice %27 {offsets = [1, 0, 0], sizes = [1, 32, 32], strides = [1, 1, 1]} : vector<4x32x32xf32> to vector<1x32x32xf32>
    %37 = vector.shape_cast %36 : vector<1x32x32xf32> to vector<32x32xf32>
    %cst_19 = arith.constant dense<0.000000e+00> : vector<16x32xf32>
    %38 = tpu.matmul %24, %37, %cst_19 {dimension_numbers = #tpu.dot_dimension_numbers<[1], [0], [0], [1], [0, 0, 1, 1], [], []>} : vector<16x32xf32>, vector<32x32xf32>, vector<16x32xf32> -> vector<16x32xf32>
    %39 = vector.extract_strided_slice %29 {offsets = [1, 0], sizes = [1, 32], strides = [1, 1]} : vector<4x32xf32> to vector<1x32xf32>
    %40 = vector.broadcast %39 : vector<1x32xf32> to vector<16x32xf32>
    %41 = arith.addf %38, %40 : vector<16x32xf32>
    %42 = vector.extract_strided_slice %27 {offsets = [2, 0, 0], sizes = [1, 32, 32], strides = [1, 1, 1]} : vector<4x32x32xf32> to vector<1x32x32xf32>
    %43 = vector.shape_cast %42 : vector<1x32x32xf32> to vector<32x32xf32>
    %cst_20 = arith.constant dense<0.000000e+00> : vector<16x32xf32>
    %44 = tpu.matmul %24, %43, %cst_20 {dimension_numbers = #tpu.dot_dimension_numbers<[1], [0], [0], [1], [0, 0, 1, 1], [], []>} : vector<16x32xf32>, vector<32x32xf32>, vector<16x32xf32> -> vector<16x32xf32>
    %45 = vector.extract_strided_slice %29 {offsets = [2, 0], sizes = [1, 32], strides = [1, 1]} : vector<4x32xf32> to vector<1x32xf32>
    %46 = vector.broadcast %45 : vector<1x32xf32> to vector<16x32xf32>
    %47 = arith.addf %44, %46 : vector<16x32xf32>
    %48 = vector.extract_strided_slice %35 {offsets = [0, 0], sizes = [16, 8], strides = [1, 1]} : vector<16x32xf32> to vector<16x8xf32>
    %49 = vector.extract_strided_slice %35 {offsets = [0, 8], sizes = [16, 8], strides = [1, 1]} : vector<16x32xf32> to vector<16x8xf32>
    %50 = vector.extract_strided_slice %35 {offsets = [0, 16], sizes = [16, 8], strides = [1, 1]} : vector<16x32xf32> to vector<16x8xf32>
    %51 = vector.extract_strided_slice %35 {offsets = [0, 24], sizes = [16, 8], strides = [1, 1]} : vector<16x32xf32> to vector<16x8xf32>
    %52 = vector.shape_cast %48 : vector<16x8xf32> to vector<1x16x8xf32>
    %53 = vector.shape_cast %49 : vector<16x8xf32> to vector<1x16x8xf32>
    %54 = vector.shape_cast %50 : vector<16x8xf32> to vector<1x16x8xf32>
    %55 = vector.shape_cast %51 : vector<16x8xf32> to vector<1x16x8xf32>
    %56 = tpu.concatenate %52, %53, %54, %55 in 0 : vector<1x16x8xf32>, vector<1x16x8xf32>, vector<1x16x8xf32>, vector<1x16x8xf32> -> vector<4x16x8xf32>
    %57 = vector.extract_strided_slice %41 {offsets = [0, 0], sizes = [16, 8], strides = [1, 1]} : vector<16x32xf32> to vector<16x8xf32>
    %58 = vector.extract_strided_slice %41 {offsets = [0, 8], sizes = [16, 8], strides = [1, 1]} : vector<16x32xf32> to vector<16x8xf32>
    %59 = vector.extract_strided_slice %41 {offsets = [0, 16], sizes = [16, 8], strides = [1, 1]} : vector<16x32xf32> to vector<16x8xf32>
    %60 = vector.extract_strided_slice %41 {offsets = [0, 24], sizes = [16, 8], strides = [1, 1]} : vector<16x32xf32> to vector<16x8xf32>
    %61 = vector.shape_cast %57 : vector<16x8xf32> to vector<1x16x8xf32>
    %62 = vector.shape_cast %58 : vector<16x8xf32> to vector<1x16x8xf32>
    %63 = vector.shape_cast %59 : vector<16x8xf32> to vector<1x16x8xf32>
    %64 = vector.shape_cast %60 : vector<16x8xf32> to vector<1x16x8xf32>
    %65 = tpu.concatenate %61, %62, %63, %64 in 0 : vector<1x16x8xf32>, vector<1x16x8xf32>, vector<1x16x8xf32>, vector<1x16x8xf32> -> vector<4x16x8xf32>
    %66 = vector.extract_strided_slice %47 {offsets = [0, 0], sizes = [16, 8], strides = [1, 1]} : vector<16x32xf32> to vector<16x8xf32>
    %67 = vector.extract_strided_slice %47 {offsets = [0, 8], sizes = [16, 8], strides = [1, 1]} : vector<16x32xf32> to vector<16x8xf32>
    %68 = vector.extract_strided_slice %47 {offsets = [0, 16], sizes = [16, 8], strides = [1, 1]} : vector<16x32xf32> to vector<16x8xf32>
    %69 = vector.extract_strided_slice %47 {offsets = [0, 24], sizes = [16, 8], strides = [1, 1]} : vector<16x32xf32> to vector<16x8xf32>
    %70 = vector.shape_cast %66 : vector<16x8xf32> to vector<1x16x8xf32>
    %71 = vector.shape_cast %67 : vector<16x8xf32> to vector<1x16x8xf32>
    %72 = vector.shape_cast %68 : vector<16x8xf32> to vector<1x16x8xf32>
    %73 = vector.shape_cast %69 : vector<16x8xf32> to vector<1x16x8xf32>
    %74 = tpu.concatenate %70, %71, %72, %73 in 0 : vector<1x16x8xf32>, vector<1x16x8xf32>, vector<1x16x8xf32>, vector<1x16x8xf32> -> vector<4x16x8xf32>
    "tpu.trace_start"() <{level = 10 : i32, message = "hmd,hkd->hmk"}> : () -> ()
    %cst_21 = arith.constant dense<0.000000e+00> : vector<4x16x16xf32>
    %75 = tpu.matmul %56, %65, %cst_21 {dimension_numbers = #tpu.dot_dimension_numbers<[2], [2], [1], [1], [0, 0, 0, 1, 1, 1], [0], [0]>} : vector<4x16x8xf32>, vector<4x16x8xf32>, vector<4x16x16xf32> -> vector<4x16x16xf32>
    "tpu.trace_stop"() : () -> ()
    %76 = vector.shape_cast %25 : vector<16x16xf32> to vector<1x16x16xf32>
    %77 = vector.broadcast %76 : vector<1x16x16xf32> to vector<4x16x16xf32>
    %78 = arith.addf %75, %77 : vector<4x16x16xf32>
    %cst_22 = arith.constant dense<0xFF800000> : vector<4x16xf32>
    %79 = vector.multi_reduction <maximumf>, %78, %cst_22 [2] : vector<4x16x16xf32> to vector<4x16xf32>
    %80 = vector.shape_cast %79 : vector<4x16xf32> to vector<4x16x1xf32>
    %81 = vector.broadcast %80 : vector<4x16x1xf32> to vector<4x16x16xf32>
    %82 = arith.subf %78, %81 : vector<4x16x16xf32>
    %83 = math.exp %82 : vector<4x16x16xf32>
    %cst_23 = arith.constant dense<0.000000e+00> : vector<4x16xf32>
    %84 = vector.multi_reduction <add>, %83, %cst_23 [2] : vector<4x16x16xf32> to vector<4x16xf32>
    %85 = vector.shape_cast %84 : vector<4x16xf32> to vector<4x16x1xf32>
    %86 = tpu.reciprocal %85 {approx = true} : vector<4x16x1xf32> -> vector<4x16x1xf32>
    %87 = vector.broadcast %86 : vector<4x16x1xf32> to vector<4x16x16xf32>
    %88 = arith.mulf %83, %87 : vector<4x16x16xf32>
    "tpu.trace_start"() <{level = 10 : i32, message = "hmk,hkd->hmd"}> : () -> ()
    %cst_24 = arith.constant dense<0.000000e+00> : vector<4x16x8xf32>
    %89 = tpu.matmul %88, %74, %cst_24 {dimension_numbers = #tpu.dot_dimension_numbers<[2], [1], [1], [2], [0, 0, 0, 1, 1, 2], [0], [0]>} : vector<4x16x16xf32>, vector<4x16x8xf32>, vector<4x16x8xf32> -> vector<4x16x8xf32>
    "tpu.trace_stop"() : () -> ()
    %90 = vector.extract_strided_slice %89 {offsets = [0, 0, 0], sizes = [1, 16, 8], strides = [1, 1, 1]} : vector<4x16x8xf32> to vector<1x16x8xf32>
    %91 = vector.shape_cast %90 : vector<1x16x8xf32> to vector<16x8xf32>
    %92 = vector.extract_strided_slice %89 {offsets = [1, 0, 0], sizes = [1, 16, 8], strides = [1, 1, 1]} : vector<4x16x8xf32> to vector<1x16x8xf32>
    %93 = vector.shape_cast %92 : vector<1x16x8xf32> to vector<16x8xf32>
    %94 = vector.extract_strided_slice %89 {offsets = [2, 0, 0], sizes = [1, 16, 8], strides = [1, 1, 1]} : vector<4x16x8xf32> to vector<1x16x8xf32>
    %95 = vector.shape_cast %94 : vector<1x16x8xf32> to vector<16x8xf32>
    %96 = vector.extract_strided_slice %89 {offsets = [3, 0, 0], sizes = [1, 16, 8], strides = [1, 1, 1]} : vector<4x16x8xf32> to vector<1x16x8xf32>
    %97 = vector.shape_cast %96 : vector<1x16x8xf32> to vector<16x8xf32>
    %98 = tpu.concatenate %91, %93, %95, %97 in 1 : vector<16x8xf32>, vector<16x8xf32>, vector<16x8xf32>, vector<16x8xf32> -> vector<16x32xf32>
    %99 = vector.extract_strided_slice %27 {offsets = [3, 0, 0], sizes = [1, 32, 32], strides = [1, 1, 1]} : vector<4x32x32xf32> to vector<1x32x32xf32>
    %100 = vector.shape_cast %99 : vector<1x32x32xf32> to vector<32x32xf32>
    %cst_25 = arith.constant dense<0.000000e+00> : vector<16x32xf32>
    %101 = tpu.matmul %98, %100, %cst_25 {dimension_numbers = #tpu.dot_dimension_numbers<[1], [0], [0], [1], [0, 0, 1, 1], [], []>} : vector<16x32xf32>, vector<32x32xf32>, vector<16x32xf32> -> vector<16x32xf32>
    %102 = vector.extract_strided_slice %29 {offsets = [3, 0], sizes = [1, 32], strides = [1, 1]} : vector<4x32xf32> to vector<1x32xf32>
    %103 = vector.broadcast %102 : vector<1x32xf32> to vector<16x32xf32>
    %104 = arith.addf %101, %103 : vector<16x32xf32>
    %105 = arith.addf %0, %104 : vector<16x32xf32>
    %106 = vector.extract_strided_slice %2 {offsets = [2, 0], sizes = [1, 32], strides = [1, 1]} : vector<6x32xf32> to vector<1x32xf32>
    %107 = vector.extract_strided_slice %2 {offsets = [3, 0], sizes = [1, 32], strides = [1, 1]} : vector<6x32xf32> to vector<1x32xf32>
    %cst_26 = arith.constant dense<0.000000e+00> : vector<16xf32>
    %108 = vector.multi_reduction <add>, %105, %cst_26 [1] : vector<16x32xf32> to vector<16xf32>
    %109 = vector.shape_cast %108 : vector<16xf32> to vector<16x1xf32>
    %cst_27 = arith.constant 3.200000e+01 : f32
    %110 = vector.broadcast %cst_27 : f32 to vector<16x1xf32>
    %111 = arith.divf %109, %110 : vector<16x1xf32>
    %112 = vector.broadcast %111 : vector<16x1xf32> to vector<16x32xf32>
    %113 = arith.subf %105, %112 : vector<16x32xf32>
    %114 = arith.mulf %113, %113 : vector<16x32xf32>
    %cst_28 = arith.constant dense<0.000000e+00> : vector<16xf32>
    %115 = vector.multi_reduction <add>, %114, %cst_28 [1] : vector<16x32xf32> to vector<16xf32>
    %116 = vector.shape_cast %115 : vector<16xf32> to vector<16x1xf32>
    %cst_29 = arith.constant 3.200000e+01 : f32
    %117 = vector.broadcast %cst_29 : f32 to vector<16x1xf32>
    %118 = arith.divf %116, %117 : vector<16x1xf32>
    %cst_30 = arith.constant 9.99999997E-7 : f32
    %119 = vector.broadcast %cst_30 : f32 to vector<16x1xf32>
    %120 = arith.addf %118, %119 : vector<16x1xf32>
    %121 = math.rsqrt %120 : vector<16x1xf32>
    %122 = vector.broadcast %121 : vector<16x1xf32> to vector<16x32xf32>
    %123 = arith.mulf %113, %122 : vector<16x32xf32>
    %124 = vector.broadcast %106 : vector<1x32xf32> to vector<16x32xf32>
    %125 = arith.mulf %123, %124 : vector<16x32xf32>
    %126 = vector.broadcast %107 : vector<1x32xf32> to vector<16x32xf32>
    %127 = arith.addf %125, %126 : vector<16x32xf32>
    %c0_31 = arith.constant 0 : index
    %c0_32 = arith.constant 0 : index
    %128 = vector.load %arg4[%c0_31, %c0_32] : memref<16x16xf32, #tpu.memory_space<vmem>>, vector<16x16xf32>
    %c1 = arith.constant 1 : index
    %c0_33 = arith.constant 0 : index
    %c0_34 = arith.constant 0 : index
    %c0_35 = arith.constant 0 : index
    %129 = vector.load %arg6[%c1, %c0_33, %c0_34, %c0_35] : memref<2x4x32x32xf32, #tpu.memory_space<vmem>>, vector<1x4x32x32xf32>
    %130 = vector.shape_cast %129 : vector<1x4x32x32xf32> to vector<4x32x32xf32>
    %c1_36 = arith.constant 1 : index
    %c0_37 = arith.constant 0 : index
    %c0_38 = arith.constant 0 : index
    %131 = vector.load %arg7[%c1_36, %c0_37, %c0_38] : memref<2x4x32xf32, #tpu.memory_space<vmem>>, vector<1x4x32xf32>
    %132 = vector.shape_cast %131 : vector<1x4x32xf32> to vector<4x32xf32>
    %133 = vector.extract_strided_slice %130 {offsets = [0, 0, 0], sizes = [1, 32, 32], strides = [1, 1, 1]} : vector<4x32x32xf32> to vector<1x32x32xf32>
    %134 = vector.shape_cast %133 : vector<1x32x32xf32> to vector<32x32xf32>
    %cst_39 = arith.constant dense<0.000000e+00> : vector<16x32xf32>
    %135 = tpu.matmul %127, %134, %cst_39 {dimension_numbers = #tpu.dot_dimension_numbers<[1], [0], [0], [1], [0, 0, 1, 1], [], []>} : vector<16x32xf32>, vector<32x32xf32>, vector<16x32xf32> -> vector<16x32xf32>
    %136 = vector.extract_strided_slice %132 {offsets = [0, 0], sizes = [1, 32], strides = [1, 1]} : vector<4x32xf32> to vector<1x32xf32>
    %137 = vector.broadcast %136 : vector<1x32xf32> to vector<16x32xf32>
    %138 = arith.addf %135, %137 : vector<16x32xf32>
    %139 = vector.extract_strided_slice %130 {offsets = [1, 0, 0], sizes = [1, 32, 32], strides = [1, 1, 1]} : vector<4x32x32xf32> to vector<1x32x32xf32>
    %140 = vector.shape_cast %139 : vector<1x32x32xf32> to vector<32x32xf32>
    %cst_40 = arith.constant dense<0.000000e+00> : vector<16x32xf32>
    %141 = tpu.matmul %1, %140, %cst_40 {dimension_numbers = #tpu.dot_dimension_numbers<[1], [0], [0], [1], [0, 0, 1, 1], [], []>} : vector<16x32xf32>, vector<32x32xf32>, vector<16x32xf32> -> vector<16x32xf32>
    %142 = vector.extract_strided_slice %132 {offsets = [1, 0], sizes = [1, 32], strides = [1, 1]} : vector<4x32xf32> to vector<1x32xf32>
    %143 = vector.broadcast %142 : vector<1x32xf32> to vector<16x32xf32>
    %144 = arith.addf %141, %143 : vector<16x32xf32>
    %145 = vector.extract_strided_slice %130 {offsets = [2, 0, 0], sizes = [1, 32, 32], strides = [1, 1, 1]} : vector<4x32x32xf32> to vector<1x32x32xf32>
    %146 = vector.shape_cast %145 : vector<1x32x32xf32> to vector<32x32xf32>
    %cst_41 = arith.constant dense<0.000000e+00> : vector<16x32xf32>
    %147 = tpu.matmul %1, %146, %cst_41 {dimension_numbers = #tpu.dot_dimension_numbers<[1], [0], [0], [1], [0, 0, 1, 1], [], []>} : vector<16x32xf32>, vector<32x32xf32>, vector<16x32xf32> -> vector<16x32xf32>
    %148 = vector.extract_strided_slice %132 {offsets = [2, 0], sizes = [1, 32], strides = [1, 1]} : vector<4x32xf32> to vector<1x32xf32>
    %149 = vector.broadcast %148 : vector<1x32xf32> to vector<16x32xf32>
    %150 = arith.addf %147, %149 : vector<16x32xf32>
    %151 = vector.extract_strided_slice %138 {offsets = [0, 0], sizes = [16, 8], strides = [1, 1]} : vector<16x32xf32> to vector<16x8xf32>
    %152 = vector.extract_strided_slice %138 {offsets = [0, 8], sizes = [16, 8], strides = [1, 1]} : vector<16x32xf32> to vector<16x8xf32>
    %153 = vector.extract_strided_slice %138 {offsets = [0, 16], sizes = [16, 8], strides = [1, 1]} : vector<16x32xf32> to vector<16x8xf32>
    %154 = vector.extract_strided_slice %138 {offsets = [0, 24], sizes = [16, 8], strides = [1, 1]} : vector<16x32xf32> to vector<16x8xf32>
    %155 = vector.shape_cast %151 : vector<16x8xf32> to vector<1x16x8xf32>
    %156 = vector.shape_cast %152 : vector<16x8xf32> to vector<1x16x8xf32>
    %157 = vector.shape_cast %153 : vector<16x8xf32> to vector<1x16x8xf32>
    %158 = vector.shape_cast %154 : vector<16x8xf32> to vector<1x16x8xf32>
    %159 = tpu.concatenate %155, %156, %157, %158 in 0 : vector<1x16x8xf32>, vector<1x16x8xf32>, vector<1x16x8xf32>, vector<1x16x8xf32> -> vector<4x16x8xf32>
    %160 = vector.extract_strided_slice %144 {offsets = [0, 0], sizes = [16, 8], strides = [1, 1]} : vector<16x32xf32> to vector<16x8xf32>
    %161 = vector.extract_strided_slice %144 {offsets = [0, 8], sizes = [16, 8], strides = [1, 1]} : vector<16x32xf32> to vector<16x8xf32>
    %162 = vector.extract_strided_slice %144 {offsets = [0, 16], sizes = [16, 8], strides = [1, 1]} : vector<16x32xf32> to vector<16x8xf32>
    %163 = vector.extract_strided_slice %144 {offsets = [0, 24], sizes = [16, 8], strides = [1, 1]} : vector<16x32xf32> to vector<16x8xf32>
    %164 = vector.shape_cast %160 : vector<16x8xf32> to vector<1x16x8xf32>
    %165 = vector.shape_cast %161 : vector<16x8xf32> to vector<1x16x8xf32>
    %166 = vector.shape_cast %162 : vector<16x8xf32> to vector<1x16x8xf32>
    %167 = vector.shape_cast %163 : vector<16x8xf32> to vector<1x16x8xf32>
    %168 = tpu.concatenate %164, %165, %166, %167 in 0 : vector<1x16x8xf32>, vector<1x16x8xf32>, vector<1x16x8xf32>, vector<1x16x8xf32> -> vector<4x16x8xf32>
    %169 = vector.extract_strided_slice %150 {offsets = [0, 0], sizes = [16, 8], strides = [1, 1]} : vector<16x32xf32> to vector<16x8xf32>
    %170 = vector.extract_strided_slice %150 {offsets = [0, 8], sizes = [16, 8], strides = [1, 1]} : vector<16x32xf32> to vector<16x8xf32>
    %171 = vector.extract_strided_slice %150 {offsets = [0, 16], sizes = [16, 8], strides = [1, 1]} : vector<16x32xf32> to vector<16x8xf32>
    %172 = vector.extract_strided_slice %150 {offsets = [0, 24], sizes = [16, 8], strides = [1, 1]} : vector<16x32xf32> to vector<16x8xf32>
    %173 = vector.shape_cast %169 : vector<16x8xf32> to vector<1x16x8xf32>
    %174 = vector.shape_cast %170 : vector<16x8xf32> to vector<1x16x8xf32>
    %175 = vector.shape_cast %171 : vector<16x8xf32> to vector<1x16x8xf32>
    %176 = vector.shape_cast %172 : vector<16x8xf32> to vector<1x16x8xf32>
    %177 = tpu.concatenate %173, %174, %175, %176 in 0 : vector<1x16x8xf32>, vector<1x16x8xf32>, vector<1x16x8xf32>, vector<1x16x8xf32> -> vector<4x16x8xf32>
    "tpu.trace_start"() <{level = 10 : i32, message = "hmd,hkd->hmk"}> : () -> ()
    %cst_42 = arith.constant dense<0.000000e+00> : vector<4x16x16xf32>
    %178 = tpu.matmul %159, %168, %cst_42 {dimension_numbers = #tpu.dot_dimension_numbers<[2], [2], [1], [1], [0, 0, 0, 1, 1, 1], [0], [0]>} : vector<4x16x8xf32>, vector<4x16x8xf32>, vector<4x16x16xf32> -> vector<4x16x16xf32>
    "tpu.trace_stop"() : () -> ()
    %179 = vector.shape_cast %128 : vector<16x16xf32> to vector<1x16x16xf32>
    %180 = vector.broadcast %179 : vector<1x16x16xf32> to vector<4x16x16xf32>
    %181 = arith.addf %178, %180 : vector<4x16x16xf32>
    %cst_43 = arith.constant dense<0xFF800000> : vector<4x16xf32>
    %182 = vector.multi_reduction <maximumf>, %181, %cst_43 [2] : vector<4x16x16xf32> to vector<4x16xf32>
    %183 = vector.shape_cast %182 : vector<4x16xf32> to vector<4x16x1xf32>
    %184 = vector.broadcast %183 : vector<4x16x1xf32> to vector<4x16x16xf32>
    %185 = arith.subf %181, %184 : vector<4x16x16xf32>
    %186 = math.exp %185 : vector<4x16x16xf32>
    %cst_44 = arith.constant dense<0.000000e+00> : vector<4x16xf32>
    %187 = vector.multi_reduction <add>, %186, %cst_44 [2] : vector<4x16x16xf32> to vector<4x16xf32>
    %188 = vector.shape_cast %187 : vector<4x16xf32> to vector<4x16x1xf32>
    %189 = tpu.reciprocal %188 {approx = true} : vector<4x16x1xf32> -> vector<4x16x1xf32>
    %190 = vector.broadcast %189 : vector<4x16x1xf32> to vector<4x16x16xf32>
    %191 = arith.mulf %186, %190 : vector<4x16x16xf32>
    "tpu.trace_start"() <{level = 10 : i32, message = "hmk,hkd->hmd"}> : () -> ()
    %cst_45 = arith.constant dense<0.000000e+00> : vector<4x16x8xf32>
    %192 = tpu.matmul %191, %177, %cst_45 {dimension_numbers = #tpu.dot_dimension_numbers<[2], [1], [1], [2], [0, 0, 0, 1, 1, 2], [0], [0]>} : vector<4x16x16xf32>, vector<4x16x8xf32>, vector<4x16x8xf32> -> vector<4x16x8xf32>
    "tpu.trace_stop"() : () -> ()
    %193 = vector.extract_strided_slice %192 {offsets = [0, 0, 0], sizes = [1, 16, 8], strides = [1, 1, 1]} : vector<4x16x8xf32> to vector<1x16x8xf32>
    %194 = vector.shape_cast %193 : vector<1x16x8xf32> to vector<16x8xf32>
    %195 = vector.extract_strided_slice %192 {offsets = [1, 0, 0], sizes = [1, 16, 8], strides = [1, 1, 1]} : vector<4x16x8xf32> to vector<1x16x8xf32>
    %196 = vector.shape_cast %195 : vector<1x16x8xf32> to vector<16x8xf32>
    %197 = vector.extract_strided_slice %192 {offsets = [2, 0, 0], sizes = [1, 16, 8], strides = [1, 1, 1]} : vector<4x16x8xf32> to vector<1x16x8xf32>
    %198 = vector.shape_cast %197 : vector<1x16x8xf32> to vector<16x8xf32>
    %199 = vector.extract_strided_slice %192 {offsets = [3, 0, 0], sizes = [1, 16, 8], strides = [1, 1, 1]} : vector<4x16x8xf32> to vector<1x16x8xf32>
    %200 = vector.shape_cast %199 : vector<1x16x8xf32> to vector<16x8xf32>
    %201 = tpu.concatenate %194, %196, %198, %200 in 1 : vector<16x8xf32>, vector<16x8xf32>, vector<16x8xf32>, vector<16x8xf32> -> vector<16x32xf32>
    %202 = vector.extract_strided_slice %130 {offsets = [3, 0, 0], sizes = [1, 32, 32], strides = [1, 1, 1]} : vector<4x32x32xf32> to vector<1x32x32xf32>
    %203 = vector.shape_cast %202 : vector<1x32x32xf32> to vector<32x32xf32>
    %cst_46 = arith.constant dense<0.000000e+00> : vector<16x32xf32>
    %204 = tpu.matmul %201, %203, %cst_46 {dimension_numbers = #tpu.dot_dimension_numbers<[1], [0], [0], [1], [0, 0, 1, 1], [], []>} : vector<16x32xf32>, vector<32x32xf32>, vector<16x32xf32> -> vector<16x32xf32>
    %205 = vector.extract_strided_slice %132 {offsets = [3, 0], sizes = [1, 32], strides = [1, 1]} : vector<4x32xf32> to vector<1x32xf32>
    %206 = vector.broadcast %205 : vector<1x32xf32> to vector<16x32xf32>
    %207 = arith.addf %204, %206 : vector<16x32xf32>
    %208 = arith.addf %105, %207 : vector<16x32xf32>
    %209 = vector.extract_strided_slice %2 {offsets = [4, 0], sizes = [1, 32], strides = [1, 1]} : vector<6x32xf32> to vector<1x32xf32>
    %210 = vector.extract_strided_slice %2 {offsets = [5, 0], sizes = [1, 32], strides = [1, 1]} : vector<6x32xf32> to vector<1x32xf32>
    %cst_47 = arith.constant dense<0.000000e+00> : vector<16xf32>
    %211 = vector.multi_reduction <add>, %208, %cst_47 [1] : vector<16x32xf32> to vector<16xf32>
    %212 = vector.shape_cast %211 : vector<16xf32> to vector<16x1xf32>
    %cst_48 = arith.constant 3.200000e+01 : f32
    %213 = vector.broadcast %cst_48 : f32 to vector<16x1xf32>
    %214 = arith.divf %212, %213 : vector<16x1xf32>
    %215 = vector.broadcast %214 : vector<16x1xf32> to vector<16x32xf32>
    %216 = arith.subf %208, %215 : vector<16x32xf32>
    %217 = arith.mulf %216, %216 : vector<16x32xf32>
    %cst_49 = arith.constant dense<0.000000e+00> : vector<16xf32>
    %218 = vector.multi_reduction <add>, %217, %cst_49 [1] : vector<16x32xf32> to vector<16xf32>
    %219 = vector.shape_cast %218 : vector<16xf32> to vector<16x1xf32>
    %cst_50 = arith.constant 3.200000e+01 : f32
    %220 = vector.broadcast %cst_50 : f32 to vector<16x1xf32>
    %221 = arith.divf %219, %220 : vector<16x1xf32>
    %cst_51 = arith.constant 9.99999997E-7 : f32
    %222 = vector.broadcast %cst_51 : f32 to vector<16x1xf32>
    %223 = arith.addf %221, %222 : vector<16x1xf32>
    %224 = math.rsqrt %223 : vector<16x1xf32>
    %225 = vector.broadcast %224 : vector<16x1xf32> to vector<16x32xf32>
    %226 = arith.mulf %216, %225 : vector<16x32xf32>
    %227 = vector.broadcast %209 : vector<1x32xf32> to vector<16x32xf32>
    %228 = arith.mulf %226, %227 : vector<16x32xf32>
    %229 = vector.broadcast %210 : vector<1x32xf32> to vector<16x32xf32>
    %230 = arith.addf %228, %229 : vector<16x32xf32>
    %c0_52 = arith.constant 0 : index
    %c0_53 = arith.constant 0 : index
    %231 = vector.load %arg8[%c0_52, %c0_53] : memref<32x128xf32, #tpu.memory_space<vmem>>, vector<32x128xf32>
    %cst_54 = arith.constant dense<0.000000e+00> : vector<16x128xf32>
    %232 = tpu.matmul %230, %231, %cst_54 {dimension_numbers = #tpu.dot_dimension_numbers<[1], [0], [0], [1], [0, 0, 1, 1], [], []>} : vector<16x32xf32>, vector<32x128xf32>, vector<16x128xf32> -> vector<16x128xf32>
    %c0_55 = arith.constant 0 : index
    %c0_56 = arith.constant 0 : index
    %233 = vector.load %arg9[%c0_55, %c0_56] : memref<1x128xf32, #tpu.memory_space<vmem>>, vector<1x128xf32>
    %234 = vector.broadcast %233 : vector<1x128xf32> to vector<16x128xf32>
    %235 = arith.addf %232, %234 : vector<16x128xf32>
    %cst_57 = arith.constant 0.000000e+00 : f32
    %236 = vector.broadcast %cst_57 : f32 to vector<16x128xf32>
    %237 = arith.maximumf %235, %236 : vector<16x128xf32>
    %c0_58 = arith.constant 0 : index
    %c0_59 = arith.constant 0 : index
    %238 = vector.load %arg10[%c0_58, %c0_59] : memref<128x32xf32, #tpu.memory_space<vmem>>, vector<128x32xf32>
    %cst_60 = arith.constant dense<0.000000e+00> : vector<16x32xf32>
    %239 = tpu.matmul %237, %238, %cst_60 {dimension_numbers = #tpu.dot_dimension_numbers<[1], [0], [0], [1], [0, 0, 1, 1], [], []>} : vector<16x128xf32>, vector<128x32xf32>, vector<16x32xf32> -> vector<16x32xf32>
    %c0_61 = arith.constant 0 : index
    %c0_62 = arith.constant 0 : index
    %240 = vector.load %arg11[%c0_61, %c0_62] : memref<1x32xf32, #tpu.memory_space<vmem>>, vector<1x32xf32>
    %241 = vector.broadcast %240 : vector<1x32xf32> to vector<16x32xf32>
    %242 = arith.addf %239, %241 : vector<16x32xf32>
    %243 = arith.addf %208, %242 : vector<16x32xf32>
    %c0_63 = arith.constant 0 : index
    %c0_64 = arith.constant 0 : index
    %244 = vector.load %arg12[%c0_63, %c0_64] : memref<16x32xf32, #tpu.memory_space<vmem>>, vector<16x32xf32>
    tpu.vector_store %arg12[%c0_63, %c0_64], %243 {strides = array<i32>} : memref<16x32xf32, #tpu.memory_space<vmem>>, vector<16x32xf32>,
    return
  }
  func.func @transform_0(%arg0: i32) -> (i32, i32) {
    %c0_i32 = arith.constant 0 : i32
    %c0_i32_0 = arith.constant 0 : i32
    %c0_i32_1 = arith.constant 0 : i32
    return %c0_i32, %c0_i32_0 : i32, i32
  }
  func.func @transform_1(%arg0: i32) -> (i32, i32) {
    %c0_i32 = arith.constant 0 : i32
    %c0_i32_0 = arith.constant 0 : i32
    %c0_i32_1 = arith.constant 0 : i32
    return %c0_i32, %c0_i32_0 : i32, i32
  }
  func.func @transform_2(%arg0: i32) -> (i32, i32) {
    %c0_i32 = arith.constant 0 : i32
    %c0_i32_0 = arith.constant 0 : i32
    %c0_i32_1 = arith.constant 0 : i32
    return %c0_i32, %c0_i32_0 : i32, i32
  }
  func.func @transform_3(%arg0: i32) -> (i32, i32) {
    %c0_i32 = arith.constant 0 : i32
    %c0_i32_0 = arith.constant 0 : i32
    %c0_i32_1 = arith.constant 0 : i32
    return %c0_i32, %c0_i32_0 : i32, i32
  }
  func.func @transform_4(%arg0: i32) -> (i32, i32) {
    %c0_i32 = arith.constant 0 : i32
    %c0_i32_0 = arith.constant 0 : i32
    %c0_i32_1 = arith.constant 0 : i32
    return %c0_i32, %c0_i32_0 : i32, i32
  }
  func.func @transform_5(%arg0: i32) -> (i32, i32, i32, i32) {
    %c0_i32 = arith.constant 0 : i32
    %c0_i32_0 = arith.constant 0 : i32
    %c0_i32_1 = arith.constant 0 : i32
    %c0_i32_2 = arith.constant 0 : i32
    %c0_i32_3 = arith.constant 0 : i32
    return %c0_i32, %c0_i32_0, %c0_i32_1, %c0_i32_2 : i32, i32, i32, i32
  }
  func.func @transform_6(%arg0: i32) -> (i32, i32, i32) {
    %c0_i32 = arith.constant 0 : i32
    %c0_i32_0 = arith.constant 0 : i32
    %c0_i32_1 = arith.constant 0 : i32
    %c0_i32_2 = arith.constant 0 : i32
    return %c0_i32, %c0_i32_0, %c0_i32_1 : i32, i32, i32
  }
  func.func @transform_7(%arg0: i32) -> (i32, i32) {
    %c0_i32 = arith.constant 0 : i32
    %c0_i32_0 = arith.constant 0 : i32
    %c0_i32_1 = arith.constant 0 : i32
    return %c0_i32, %c0_i32_0 : i32, i32
  }
  func.func @transform_8(%arg0: i32) -> (i32, i32) {
    %c0_i32 = arith.constant 0 : i32
    %c0_i32_0 = arith.constant 0 : i32
    %c0_i32_1 = arith.constant 0 : i32
    return %c0_i32, %c0_i32_0 : i32, i32
  }
  func.func @transform_9(%arg0: i32) -> (i32, i32) {
    %c0_i32 = arith.constant 0 : i32
    %c0_i32_0 = arith.constant 0 : i32
    %c0_i32_1 = arith.constant 0 : i32
    return %c0_i32, %c0_i32_0 : i32, i32
  }
  func.func @transform_10(%arg0: i32) -> (i32, i32) {
    %c0_i32 = arith.constant 0 : i32
    %c0_i32_0 = arith.constant 0 : i32
    %c0_i32_1 = arith.constant 0 : i32
    return %c0_i32, %c0_i32_0 : i32, i32
  }
  func.func @transform_11(%arg0: i32) -> (i32, i32) {
    %c0_i32 = arith.constant 0 : i32
    %c0_i32_0 = arith.constant 0 : i32
    %c0_i32_1 = arith.constant 0 : i32
    return %c0_i32, %c0_i32_0 : i32, i32
  }
}

</mosaic_0001>

<bundles_post_ra>
// kernel: tpu_custom_call.1
= control target key start
LH: loop header
LB: loop body
LE: loop exit
PB: predicated region body
PF: predicated region fallthrough
CT: control target
= control target key end

     0   :  { %16 = vsyncpa [#allocation3], 0  ;;  %s4056_s0 = inlined_call_operand.vmem [shape: f32[16,32], index: 0, kind: input, shape index: {}]   ;;  %s4057_s1 = inlined_call_operand.vmem [shape: f32[16,32], index: 1, kind: input, shape index: {}]   ;;  %s4058_s2 = inlined_call_operand.vmem [shape: f32[16,16], index: 2, kind: input, shape index: {}]   ;;  %s4059_s3 = inlined_call_operand.vmem [shape: f32[16,16], index: 3, kind: input, shape index: {}]   ;;  %s4060_s4 = inlined_call_operand.vmem [shape: f32[6,32], index: 4, kind: input, shape index: {}]   ;;  %s4061_s5 = inlined_call_operand.hbm [shape: f32[2,4,32,32], index: 5, kind: input, shape index: {}]   ;;  %s4062_s6 = inlined_call_operand.vmem [shape: f32[2,4,32], index: 6, kind: input, shape index: {}]   ;;  %s4063_s7 = inlined_call_operand.vmem [shape: f32[32,128], index: 7, kind: input, shape index: {}]   ;;  %s4064_s8 = inlined_call_operand.vmem [shape: f32[1,128], index: 8, kind: input, shape index: {}]   ;;  %s4065_s9 = inlined_call_operand.vmem [shape: f32[128,32], index: 9, kind: input, shape index: {}]   ;;  %s4066_s10 = inlined_call_operand.vmem [shape: f32[1,32], index: 10, kind: input, shape index: {}]   ;;  %s4067_s11 = inlined_call_operand.hbm [shape: f32[16,32], index: 11, kind: output, shape index: {}]  }
   0x1   :  { %17 = vsyncpa [#allocation4], 0  ;;  %s3569_s17 = smov [#allocation2]   ;;  %s3521_s21 = scalar_lea.hbm %s4061_s5, 4096 }
   0x2   :  { %s33_s18 = sshll.u32 %s3569_s17, 4  ;;  %p3522_p0 = scmp.ne.s32.totalorder %s4061_s5, %s3521_s21  ;;  %s34_s18 = int_to_ptr.vmem [resolvable:$true] %s33_s18 }
   0x3   :  { %p3525_p1 = scmp.lt.u32.totalorder %s3521_s21, %s4061_s5 }
   0x5   :  { %p3527_p2 = pnand %p3525_p1, %p3522_p0 }
   0x7   :  { %3530 = shalt.err (!%p3527_p2)
}
   0x8   :  { %s3531_s26 = scalar_lea.vmem %s34_s18, 4096  ;;  %p3536_p4 = scmp.lt.s32.totalorder %s34_s18, %s34_s18 }
   0x9   :  { %p3532_p3 = scmp.ne.s32.totalorder %s34_s18, %s3531_s26  ;;  %p3537_p5 = scmp.lt.s32.totalorder %s3531_s26, %s3531_s26 }
   0xb   :  { %p3538_p6 = por %p3537_p5, %p3536_p4 }
   0xd   :  { %p3539_p7 = pnand %p3538_p6, %p3532_p3 }
   0xf   :  { %3542 = shalt.err (!%p3539_p7)
}
  0x10   :  { %s3570_s27 = smov 128   ;;  %s3571_s28 = smov 8  }
  0x11   :  { %39 = dma.hbm_to_vmem [thread:$0]  %s4061_s5, 4096, %s34_s18, [#allocation3], %s3570_s27, %s3570_s27, %s3571_s28  }
  0x12   :  { %3565 = dma.done.wait [#allocation3], 4096  }
  0x13   :  { %3566 = vsyncadd [#allocation3], 4294963200  ;;  %vm58_vm0 = vcmask 261120   ;;  %v3656_v0 = vld [vmem:[%s4056_s0] sm:$0xff]  ;;  %v3661_v1 = vld [vmem:[%s4056_s0 + $0x8] sm:$0xff]  ;;  %v86_v25 = vlaneseq  ;;  %vm408_vm1 = vcmask 64512  }
  0x14   :  { %v59_v2 = vsel %vm58_vm0, %v3656_v0, 0.0  ;;  %v62_v3 = vsel %vm58_vm0, %v3661_v1, 0.0  ;;  %v100_v14 = vld [vmem:[#allocation2] sm:$0xff]  ;;  %v101_v15 = vld [vmem:[#allocation2 + $0x8] sm:$0xff]  ;;  %v102_v16 = vld [vmem:[#allocation2 + $0x10] sm:$0xff]  ;;  %s3572_s18 = smov 112  }
  0x15   :  { %60 = vadd.xlane.f32.xlu0 %v59_v2  ;;  %v3191_v17 = vpack.c.bf16 %v101_v15, %v100_v14  ;;  %v103_v18 = vld [vmem:[#allocation2 + $0x18] sm:$0xff]  ;;  %v104_v20 = vld [vmem:[#allocation2 + $0x20] sm:$0xff]  ;;  %v105_v21 = vld [vmem:[#allocation2 + $0x28] sm:$0xff]  ;;  %v3671_v29 = vshrl.u32 %v86_v25, 7  ;;  %s3573_s19 = smov 120   ;;  %s3574_s20 = smov 104  }
  0x16   :  { %v3195_v19 = vpack.c.bf16 %v103_v18, %v102_v16  ;;  %v3199_v22 = vpack.c.bf16 %v105_v21, %v104_v20  ;;  %v3679_v32 = vld [vmem:[%s4060_s4] sm:$0x3f]  ;;  %v106_v42 = vld [vmem:[#allocation2 + $0x30] sm:$0xff]  ;;  %v107_v43 = vld [vmem:[#allocation2 + $0x38] sm:$0xff]  ;;  %vm741_vm3 = vcmask 130048   ;;  %s3576_s25 = smov 24  }
  0x17   :  { %3192 = vmatprep.subr.bf16.mxu1 %v3191_v17  ;;  %v3674_v31 = vsub.s32 0, %v3671_v29  ;;  %v3682_v33 = vsub.s32 1, %v3671_v29  ;;  %v3203_v46 = vpack.c.bf16 %v107_v43, %v106_v42  ;;  %v108_v47 = vld [vmem:[#allocation2 + $0x40] sm:$0xff]  ;;  %v109_v48 = vld [vmem:[#allocation2 + $0x48] sm:$0xff]  ;;  %v110_v50 = vld [vmem:[#allocation2 + $0x50] sm:$0xff]  ;;  %v3705_v62 = vsub.s32 2, %v3671_v29 }
  0x18   :  { %3194 = vmatpush3.bf16.msra.mxu1 %v3191_v17  ;;  %v3207_v49 = vpack.c.bf16 %v109_v48, %v108_v47  ;;  %v111_v51 = vld [vmem:[#allocation2 + $0x58] sm:$0xff]  ;;  %v3697_v53 = vld [vmem:[%s4062_s6] sm:$0xf]  ;;  %vm3709_vm2 = vmpackc.low %vm408_vm1, %vm408_vm1  ;;  %vm1182_vm4 = vcmask 195584  }
  0x19   :  { %63 = vadd.xlane.f32.xlu0 %v62_v3  ;;  %3196 = vmatprep.subr.bf16.mxu1 %v3195_v19  ;;  %v89_v34 = vrot.slane %v3679_v32, %v3674_v31  ;;  %v95_v37 = vrot.slane %v3679_v32, %v3682_v33  ;;  %v3211_v52 = vpack.c.bf16 %v111_v51, %v110_v50 }
  0x1a   :  { %v120_v54 = vrot.slane %v3697_v53, %v3674_v31  ;;  %v205_v58 = vrot.slane %v3697_v53, %v3682_v33 }
  0x1c   :  { %3198 = vmatpush3.bf16.msra.mxu1 %v3195_v19 }
  0x1d   :  { %3200 = vmatprep.subr.bf16.mxu1 %v3199_v22 }
  0xa2   :  { %v61_v4 = vpop.xlane.xlu0 %60 }
  0xa3   :  { %v66_v5 = vmul.f32 0.03125, %v61_v4  ;;  %v1310_v4 = vld [vmem:[%s4059_s3] sm:$0xff] }
  0xa5   :  { %v68_v6 = vsub.f32 %v3656_v0, %v66_v5  ;;  %v284_v5 = vrot.slane %v3697_v53, %v3705_v62 }
  0xa6   :  { %v64_v7 = vpop.xlane.xlu0 %63 }
  0xa7   :  { %v67_v8 = vmul.f32 0.03125, %v64_v7  ;;  %v70_v9 = vmul.f32 %v68_v6, %v68_v6 }
  0xa9   :  { %v69_v10 = vsub.f32 %v3661_v1, %v67_v8  ;;  %v72_v11 = vsel %vm58_vm0, %v70_v9, 0.0 }
  0xaa   :  { %73 = vadd.xlane.f32.xlu1 %v72_v11 }
  0xab   :  { %v71_v12 = vmul.f32 %v69_v10, %v69_v10 }
  0xad   :  { %v75_v13 = vsel %vm58_vm0, %v71_v12, 0.0 }
  0xae   :  { %76 = vadd.xlane.f32.xlu1 %v75_v13 }
 0x137   :  { %v74_v23 = vpop.xlane.xlu1 %73 }
 0x138   :  { %v78_v24 = vmul.f32 0.03125, %v74_v23 }
 0x13a   :  { %v80_v26 = vadd.f32 1e-06, %v78_v24 }
 0x13b   :  { %v77_v27 = vpop.xlane.xlu1 %76 }
 0x13c   :  { %3444 = vrsqrt.f32 %v80_v26  ;;  %v79_v28 = vmul.f32 0.03125, %v77_v27 }
 0x13e   :  { %v81_v30 = vadd.f32 1e-06, %v79_v28 }
 0x140   :  { %3446 = vrsqrt.f32 %v81_v30 }
 0x146   :  { %v3445_v35 = vpop.eup %3444 }
 0x147   :  { %v84_v36 = vmul.f32 %v3445_v35, %v68_v6  ;;  %v99_v35 = vld [vmem:[%s4058_s2 + $0x8] sm:$0xff] }
 0x149   :  { %v90_v38 = vmul.f32 %v89_v34, %v84_v36  ;;  %v98_v36 = vld [vmem:[%s4058_s2] sm:$0xff]  ;;  %s3575_s2 = smov 16  }
 0x14a   :  { %v3447_v39 = vpop.eup %3446 }
 0x14b   :  { %v96_v40 = vadd.f32 %v95_v37, %v90_v38  ;;  %v85_v41 = vmul.f32 %v3447_v39, %v69_v10 }
 0x14d   :  { %2953 = vmatprep.mubr.msk.f32.mxu1 %vm58_vm0, %v96_v40  ;;  %v91_v44 = vmul.f32 %v89_v34, %v85_v41 }
 0x14f   :  { %v97_v45 = vadd.f32 %v95_v37, %v91_v44 }
 0x151   :  { %2954 = vmatmul.mubr.msk.f32.vlgmr.msra.gmra.mrb[0].mxu1 %vm58_vm0, %v97_v45 }
 0x152   :  { %3202 = vmatpush3.bf16.msra.mxu1 %v3199_v22  ;;  %2964 = vmatprep.mubr.msk.f32.mxu1 %vm58_vm0, %v96_v40 }
 0x153   :  { %3204 = vmatprep.subr.bf16.mxu1 %v3203_v46 }
 0x156   :  { %3206 = vmatpush3.bf16.msra.mxu1 %v3203_v46 }
 0x157   :  { %3208 = vmatprep.subr.bf16.mxu1 %v3207_v49 }
 0x159   :  { %2965 = vmatmul.mubr.msk.f32.vlgmr.msra.gmra.mrb[2].mxu1 %vm58_vm0, %v97_v45 }
 0x15a   :  { %3210 = vmatpush3.bf16.msra.mxu1 %v3207_v49  ;;  %2975 = vmatprep.mubr.msk.f32.mxu1 %vm58_vm0, %v96_v40 }
 0x15b   :  { %3212 = vmatprep.subr.bf16.mxu1 %v3211_v52 }
 0x15e   :  { %3214 = vmatpush3.bf16.msra.mxu1 %v3211_v52 }
 0x161   :  { %2976 = vmatmul.mubr.msk.f32.vlgmr.msra.gmra.mrb[4].mxu1 %vm58_vm0, %v97_v45 }
 0x224   :  { %v2955_v55 = vpop.f32.mrb[0].mxu1 }
 0x225   :  { %v193_v56 = vpop.f32.mrb[1].mxu1  ;;  %v199_v6 = vadd.f32 %v2955_v55, %v120_v54 }
 0x226   :  { %v194_v57 = vadd.f32 %v193_v56, %v120_v54 }
 0x228   :  { %2982 = vmatprep.mubr.msk.f32.mxu1 %vm408_vm1, %v194_v57 }
 0x22c   :  { %v2966_v59 = vpop.f32.mrb[2].mxu1 }
 0x22d   :  { %v278_v60 = vadd.f32 %v2966_v59, %v205_v58  ;;  %v272_v61 = vpop.f32.mrb[3].mxu1 }
 0x22e   :  { %v273_v63 = vadd.f32 %v272_v61, %v205_v58 }
 0x230   :  { %v3389_v2 = vpack.i.bf16 %v278_v60, %v273_v63  ;;  %v3215_v3 = vpack.c.bf16 %v278_v60, %v273_v63 }
 0x232   :  { %3390 = vrot.lane.b32.xlu1 %v3389_v2, %s3572_s18  ;;  %3385 = vrot.lane.b32.xlu0 %v3389_v2, %s3573_s19 }
 0x233   :  { %3217 = vmatprep.subr.msk.bf16.mxu1 %vm3709_vm2, %v3215_v3 }
 0x234   :  { %3220 = vmatpush3.bf16.xpose.msk.msra.mxu1 %vm3709_vm2, %v3215_v3  ;;  %v2977_v7 = vpop.f32.mrb[4].mxu1 }
 0x235   :  { %v357_v8 = vadd.f32 %v2977_v7, %v284_v5  ;;  %v351_v9 = vpop.f32.mrb[5].mxu1 }
 0x236   :  { %v352_v10 = vadd.f32 %v351_v9, %v284_v5  ;;  %3395 = vrot.lane.b32.xlu1 %v3389_v2, %s3574_s20  ;;  %364 = vrot.lane.b32.xlu0 %v199_v6, %s3573_s19 }
 0x238   :  { %v3239_v11 = vpack.c.bf16 %v357_v8, %v352_v10  ;;  %v3723_v12 = vpack.i.bf16 %v357_v8, %v352_v10 }
 0x23a   :  { %368 = vrot.lane.b32.xlu0 %v199_v6, %s3572_s18  ;;  %362 = vrot.lane.b32.xlu1 %v194_v57, %s3573_s19 }
 0x23b   :  { %2983 = vmatmul.mubr.msk.f32.vlgmr.msra.gmra.mrb[6].mxu1 %vm408_vm1, %v199_v6 }
 0x23e   :  { %372 = vrot.lane.b32.xlu0 %v199_v6, %s3574_s20  ;;  %366 = vrot.lane.b32.xlu1 %v194_v57, %s3572_s18 }
 0x242   :  { %370 = vrot.lane.b32.xlu1 %v194_v57, %s3574_s20 }
 0x2a4   :  { %v3391_v13 = vpop.permute.xlu1 %3390  ;;  %v3386_v14 = vpop.permute.xlu0 %3385 }
 0x2a5   :  { %v3393_v15 = vunpack.i.h.bf16 %v3391_v13  ;;  %v3392_v16 = vunpack.i.l.bf16 %v3391_v13  ;;  %v3388_v17 = vunpack.i.h.bf16 %v3386_v14  ;;  %v3387_v18 = vunpack.i.l.bf16 %v3386_v14 }
 0x2a7   :  { %v3227_v19 = vpack.c.bf16 %v3393_v15, %v3392_v16  ;;  %v3221_v20 = vpack.c.bf16 %v3388_v17, %v3387_v18 }
 0x2a8   :  { %v3396_v21 = vpop.permute.xlu1 %3395  ;;  %v365_v25 = vpop.permute.xlu0 %364 }
 0x2a9   :  { %v3398_v22 = vunpack.i.h.bf16 %v3396_v21  ;;  %v3397_v23 = vunpack.i.l.bf16 %v3396_v21  ;;  %3223 = vmatprep.subr.msk.bf16.mxu0 %vm3709_vm2, %v3221_v20  ;;  %3229 = vmatprep.subr.msk.bf16.mxu1 %vm3709_vm2, %v3227_v19 }
 0x2aa   :  { %3226 = vmatpush3.bf16.xpose.msk.msra.mxu0 %vm3709_vm2, %v3221_v20  ;;  %3232 = vmatpush3.bf16.xpose.msk.msra.mxu1 %vm3709_vm2, %v3227_v19 }
 0x2ab   :  { %v3233_v24 = vpack.c.bf16 %v3398_v22, %v3397_v23  ;;  %3240 = vmatprep.subr.bf16.mxu1 %v3239_v11 }
 0x2ac   :  { %v363_v26 = vpop.permute.xlu1 %362  ;;  %v369_v28 = vpop.permute.xlu0 %368 }
 0x2ad   :  { %2989 = vmatprep.mubr.msk.f32.mxu0 %vm408_vm1, %v363_v26  ;;  %3235 = vmatprep.subr.msk.bf16.mxu0 %vm3709_vm2, %v3233_v24 }
 0x2b0   :  { %v367_v27 = vpop.permute.xlu1 %366  ;;  %v373_v34 = vpop.permute.xlu0 %372 }
 0x2b1   :  { %2990 = vmatmul.mubr.msk.f32.vlgmr.msra.gmra.mrb[0].mxu0 %vm408_vm1, %v365_v25  ;;  %2996 = vmatprep.mubr.msk.f32.mxu1 %vm408_vm1, %v367_v27 }
 0x2b2   :  { %2997 = vmatmul.mubr.msk.f32.vlgmr.msra.gmra.mrb[8].mxu1 %vm408_vm1, %v369_v28  ;;  %3238 = vmatpush3.bf16.xpose.msk.msra.mxu0 %vm3709_vm2, %v3233_v24 }
 0x2b3   :  { %3242 = vmatpush3.bf16.msra.mxu1 %v3239_v11 }
 0x2b4   :  { %v371_v30 = vpop.permute.xlu1 %370 }
 0x2b5   :  { %3003 = vmatprep.mubr.msk.f32.mxu0 %vm408_vm1, %v371_v30 }
 0x2b9   :  { %3004 = vmatmul.mubr.msk.f32.vlgmr.msra.gmra.mrb[2].mxu0 %vm408_vm1, %v373_v34 }
 0x30e   :  { %v2984_v37 = vpop.f32.mrb[6].mxu1 }
 0x30f   :  { %v489_v38 = vadd.f32 %v2984_v37, %v99_v35  ;;  %v483_v39 = vpop.f32.mrb[7].mxu1 }
 0x310   :  { %v484_v40 = vadd.f32 %v483_v39, %v98_v36 }
 0x311   :  { %v745_v41 = vsel %vm741_vm3, %v489_v38, -inf }
 0x312   :  { %746 = vmax.xlane.f32.xlu0 %v745_v41  ;;  %v742_v42 = vsel %vm741_vm3, %v484_v40, -inf }
 0x313   :  { %743 = vmax.xlane.f32.xlu1 %v742_v42 }
 0x384   :  { %v2991_v43 = vpop.f32.mrb[0].mxu0 }
 0x385   :  { %v572_v44 = vadd.f32 %v2991_v43, %v99_v35  ;;  %v566_v45 = vpop.f32.mrb[1].mxu0  ;;  %v2998_v46 = vpop.f32.mrb[8].mxu1 }
 0x386   :  { %v649_v47 = vpop.f32.mrb[9].mxu1  ;;  %v567_v48 = vadd.f32 %v566_v45, %v98_v36  ;;  %v655_v52 = vadd.f32 %v2998_v46, %v99_v35 }
 0x387   :  { %v650_v49 = vadd.f32 %v649_v47, %v98_v36  ;;  %v751_v50 = vsel %vm741_vm3, %v572_v44, -inf }
 0x388   :  { %752 = vmax.xlane.f32.xlu0 %v751_v50  ;;  %v748_v54 = vsel %vm741_vm3, %v567_v48, -inf  ;;  %v757_v59 = vsel %vm741_vm3, %v655_v52, -inf }
 0x389   :  { %v754_v51 = vsel %vm741_vm3, %v650_v49, -inf }
 0x38a   :  { %755 = vmax.xlane.f32.xlu1 %v754_v51 }
 0x38c   :  { %v3005_v55 = vpop.f32.mrb[2].mxu0  ;;  %749 = vmax.xlane.f32.xlu0 %v748_v54 }
 0x38d   :  { %v732_v56 = vpop.f32.mrb[3].mxu0  ;;  %v738_v58 = vadd.f32 %v3005_v55, %v99_v35 }
 0x38e   :  { %v733_v57 = vadd.f32 %v732_v56, %v98_v36 }
 0x38f   :  { %v763_v61 = vsel %vm741_vm3, %v738_v58, -inf }
 0x390   :  { %758 = vmax.xlane.f32.xlu0 %v757_v59  ;;  %v760_v60 = vsel %vm741_vm3, %v733_v57, -inf }
 0x391   :  { %761 = vmax.xlane.f32.xlu1 %v760_v60 }
 0x394   :  { %764 = vmax.xlane.f32.xlu0 %v763_v61 }
 0x39f   :  { %v747_v63 = vpop.xlane.xlu0 %746 }
 0x3a0   :  { %v767_v2 = vsub.f32 %v489_v38, %v747_v63  ;;  %v744_v5 = vpop.xlane.xlu1 %743 }
 0x3a1   :  { %v766_v8 = vsub.f32 %v484_v40, %v744_v5 }
 0x3a2   :  { %v776_v3 = vmul.f32 1.442695, %v767_v2  ;;  %3400 = vrot.lane.b32.xlu1 %v3723_v12, %s3573_s19 }
 0x3a3   :  { %v774_v9 = vmul.f32 1.442695, %v766_v8 }
 0x3a4   :  { %3448 = vpow2.f32 %v776_v3 }
 0x3a5   :  { %3450 = vpow2.f32 %v774_v9 }
 0x3ae   :  { %v3765_v6 = vpop.eup %3448 }
 0x3af   :  { %v793_v7 = vsel %vm741_vm3, %v3765_v6, 0.0  ;;  %v3451_v10 = vpop.eup %3450 }
 0x3b0   :  { %794 = vadd.xlane.f32.xlu0 %v793_v7  ;;  %v790_v11 = vsel %vm741_vm3, %v3451_v10, 0.0 }
 0x3c6   :  { %791 = vadd.xlane.f32.xlu1 %v790_v11 }
 0x415   :  { %v753_v13 = vpop.xlane.xlu0 %752 }
 0x416   :  { %v769_v14 = vsub.f32 %v572_v44, %v753_v13 }
 0x417   :  { %v756_v15 = vpop.xlane.xlu1 %755 }
 0x418   :  { %v780_v16 = vmul.f32 1.442695, %v769_v14  ;;  %v770_v17 = vsub.f32 %v650_v49, %v756_v15 }
 0x419   :  { %v750_v18 = vpop.xlane.xlu0 %749 }
 0x41a   :  { %3452 = vpow2.f32 %v780_v16  ;;  %v768_v19 = vsub.f32 %v567_v48, %v750_v18  ;;  %v782_v20 = vmul.f32 1.442695, %v770_v17 }
 0x41c   :  { %v778_v21 = vmul.f32 1.442695, %v768_v19 }
 0x41d   :  { %v759_v22 = vpop.xlane.xlu0 %758 }
 0x41e   :  { %3454 = vpow2.f32 %v778_v21  ;;  %v771_v23 = vsub.f32 %v655_v52, %v759_v22  ;;  %v762_v24 = vpop.xlane.xlu1 %761 }
 0x41f   :  { %v772_v25 = vsub.f32 %v733_v57, %v762_v24  ;;  %3456 = vpow2.f32 %v782_v20 }
 0x420   :  { %v784_v26 = vmul.f32 1.442695, %v771_v23 }
 0x421   :  { %v786_v27 = vmul.f32 1.442695, %v772_v25  ;;  %v765_v28 = vpop.xlane.xlu0 %764 }
 0x422   :  { %3458 = vpow2.f32 %v784_v26  ;;  %v773_v30 = vsub.f32 %v738_v58, %v765_v28  ;;  %v3401_v34 = vpop.permute.xlu1 %3400  ;;  %v112_v26 = vld [vmem:[#allocation2 + $0x60] sm:$0xff] }
 0x423   :  { %v3403_v35 = vunpack.i.h.bf16 %v3401_v34  ;;  %v3402_v36 = vunpack.i.l.bf16 %v3401_v34  ;;  %3460 = vpow2.f32 %v786_v27  ;;  %v113_v27 = vld [vmem:[#allocation2 + $0x68] sm:$0xff]  ;;  %v115_v34 = vld [vmem:[#allocation2 + $0x78] sm:$0xff] }
 0x424   :  { %v3453_v37 = vpop.eup %3452  ;;  %v788_v38 = vmul.f32 1.442695, %v773_v30  ;;  %v3255_v28 = vpack.c.bf16 %v113_v27, %v112_v26  ;;  %v114_v30 = vld [vmem:[#allocation2 + $0x70] sm:$0xff] }
 0x425   :  { %v3243_v39 = vpack.c.bf16 %v3403_v35, %v3402_v36  ;;  %v799_v40 = vsel %vm741_vm3, %v3453_v37, 0.0  ;;  %v3259_v35 = vpack.c.bf16 %v115_v34, %v114_v30 }
 0x426   :  { %3462 = vpow2.f32 %v788_v38  ;;  %800 = vadd.xlane.f32.xlu0 %v799_v40 }
 0x427   :  { %3244 = vmatprep.subr.bf16.mxu1 %v3243_v39 }
 0x428   :  { %v3455_v41 = vpop.eup %3454 }
 0x429   :  { %v796_v42 = vsel %vm741_vm3, %v3455_v41, 0.0  ;;  %v3457_v43 = vpop.eup %3456 }
 0x42a   :  { %797 = vadd.xlane.f32.xlu1 %v796_v42  ;;  %v802_v46 = vsel %vm741_vm3, %v3457_v43, 0.0 }
 0x42c   :  { %v3459_v44 = vpop.eup %3458 }
 0x42d   :  { %v805_v45 = vsel %vm741_vm3, %v3459_v44, 0.0  ;;  %v3461_v47 = vpop.eup %3460 }
 0x42e   :  { %806 = vadd.xlane.f32.xlu0 %v805_v45  ;;  %803 = vadd.xlane.f32.xlu1 %v802_v46  ;;  %v808_v50 = vsel %vm741_vm3, %v3461_v47, 0.0 }
 0x430   :  { %v3463_v48 = vpop.eup %3462 }
 0x431   :  { %v811_v49 = vsel %vm741_vm3, %v3463_v48, 0.0 }
 0x432   :  { %812 = vadd.xlane.f32.xlu0 %v811_v49  ;;  %809 = vadd.xlane.f32.xlu1 %v808_v50 }
 0x43d   :  { %v795_v51 = vpop.xlane.xlu0 %794 }
 0x43e   :  { %3464 = vrcp.f32 %v795_v51 }
 0x443   :  { %3410 = vrot.lane.b32.xlu1 %v3723_v12, %s3574_s20 }
 0x448   :  { %3405 = vrot.lane.b32.xlu0 %v3723_v12, %s3572_s18  ;;  %v3465_v54 = vpop.eup %3464 }
 0x449   :  { %v823_v57 = vmul.f32 %v3465_v54, %v3765_v6 }
 0x453   :  { %v792_v52 = vpop.xlane.xlu1 %791 }
 0x454   :  { %3466 = vrcp.f32 %v792_v52 }
 0x45e   :  { %v3467_v55 = vpop.eup %3466 }
 0x45f   :  { %v822_v56 = vmul.f32 %v3467_v55, %v3451_v10  ;;  %v3804_v55 = vsub.s32 3, %v3671_v29 }
 0x461   :  { %3010 = vmatprep.mubr.msk.f32.mxu1 %vm741_vm3, %v822_v56  ;;  %v1188_v56 = vrot.slane %v3697_v53, %v3804_v55  ;;  %v1318_v53 = vld [vmem:[#allocation2 + $0xa8] sm:$0xff] }
 0x462   :  { %3011 = vmatmul.mubr.msk.f32.vlgmr.msra.gmra.mrb[10].mxu1 %vm741_vm3, %v823_v57 }
 0x463   :  { %3246 = vmatpush3.bf16.msra.mxu1 %v3243_v39 }
 0x4b3   :  { %v801_v58 = vpop.xlane.xlu0 %800 }
 0x4b4   :  { %3468 = vrcp.f32 %v801_v58 }
 0x4b7   :  { %v798_v59 = vpop.xlane.xlu1 %797 }
 0x4b8   :  { %3470 = vrcp.f32 %v798_v59 }
 0x4bb   :  { %v807_v60 = vpop.xlane.xlu0 %806  ;;  %v804_v12 = vpop.xlane.xlu1 %803 }
 0x4bc   :  { %3472 = vrcp.f32 %v807_v60 }
 0x4bd   :  { %3474 = vrcp.f32 %v804_v12 }
 0x4be   :  { %v3469_v2 = vpop.eup %3468 }
 0x4bf   :  { %v813_v61 = vpop.xlane.xlu0 %812  ;;  %v810_v63 = vpop.xlane.xlu1 %809  ;;  %v825_v5 = vmul.f32 %v3469_v2, %v3453_v37 }
 0x4c0   :  { %3476 = vrcp.f32 %v813_v61 }
 0x4c1   :  { %3478 = vrcp.f32 %v810_v63 }
 0x4c2   :  { %v3471_v3 = vpop.eup %3470 }
 0x4c3   :  { %v3406_v6 = vpop.permute.xlu0 %3405  ;;  %v3411_v7 = vpop.permute.xlu1 %3410  ;;  %v824_v8 = vmul.f32 %v3471_v3, %v3455_v41  ;;  %v1317_v3 = vld [vmem:[#allocation2 + $0xa0] sm:$0xff] }
 0x4c4   :  { %v3408_v9 = vunpack.i.h.bf16 %v3406_v6  ;;  %v3407_v10 = vunpack.i.l.bf16 %v3406_v6  ;;  %v3413_v11 = vunpack.i.h.bf16 %v3411_v7  ;;  %v3412_v13 = vunpack.i.l.bf16 %v3411_v7 }
 0x4c5   :  { %3017 = vmatprep.mubr.msk.f32.mxu1 %vm741_vm3, %v824_v8 }
 0x4c6   :  { %v3473_v14 = vpop.eup %3472  ;;  %v3247_v15 = vpack.c.bf16 %v3408_v9, %v3407_v10  ;;  %v3251_v16 = vpack.c.bf16 %v3413_v11, %v3412_v13  ;;  %3018 = vmatmul.mubr.msk.f32.vlgmr.msra.gmra.mrb[12].mxu1 %vm741_vm3, %v825_v5  ;;  %v3271_v5 = vpack.c.bf16 %v1318_v53, %v1317_v3 }
 0x4c7   :  { %v3475_v17 = vpop.eup %3474  ;;  %v827_v20 = vmul.f32 %v3473_v14, %v3459_v44 }
 0x4c8   :  { %3248 = vmatprep.subr.bf16.mxu0 %v3247_v15  ;;  %3252 = vmatprep.subr.bf16.mxu1 %v3251_v16  ;;  %v826_v18 = vmul.f32 %v3475_v17, %v3457_v43 }
 0x4c9   :  { %3250 = vmatpush3.bf16.msra.mxu0 %v3247_v15  ;;  %3254 = vmatpush3.bf16.msra.mxu1 %v3251_v16  ;;  %v1319_v15 = vld [vmem:[#allocation2 + $0xb0] sm:$0xff]  ;;  %v1320_v16 = vld [vmem:[#allocation2 + $0xb8] sm:$0xff] }
 0x4ca   :  { %v3477_v19 = vpop.eup %3476  ;;  %3024 = vmatprep.mubr.msk.f32.mxu0 %vm741_vm3, %v826_v18  ;;  %3256 = vmatprep.subr.bf16.mxu0 %v3255_v28  ;;  %v3275_v17 = vpack.c.bf16 %v1320_v16, %v1319_v15  ;;  %v55_v18 = vld [vmem:[%s4057_s1] sm:$0xff] }
 0x4cb   :  { %v3479_v21 = vpop.eup %3478  ;;  %v829_v22 = vmul.f32 %v3477_v19, %v3463_v48  ;;  %v56_v19 = vld [vmem:[%s4057_s1 + $0x8] sm:$0xff] }
 0x4cc   :  { %3025 = vmatmul.mubr.msk.f32.vlgmr.msra.gmra.mrb[4].mxu0 %vm741_vm3, %v827_v20  ;;  %v828_v23 = vmul.f32 %v3479_v21, %v3461_v47  ;;  %v1313_v20 = vld [vmem:[#allocation2 + $0x80] sm:$0xff]  ;;  %v1314_v21 = vld [vmem:[#allocation2 + $0x88] sm:$0xff] }
 0x4cd   :  { %3258 = vmatpush3.bf16.msra.mxu0 %v3255_v28 }
 0x4ce   :  { %3031 = vmatprep.mubr.msk.f32.mxu1 %vm741_vm3, %v828_v23  ;;  %3260 = vmatprep.subr.bf16.mxu0 %v3259_v35  ;;  %v1315_v23 = vld [vmem:[#allocation2 + $0x90] sm:$0xff] }
 0x4cf   :  { %3032 = vmatmul.mubr.msk.f32.vlgmr.msra.gmra.mrb[14].mxu1 %vm741_vm3, %v829_v22  ;;  %v3263_v22 = vpack.c.bf16 %v1314_v21, %v1313_v20 }
 0x4d1   :  { %3262 = vmatpush3.bf16.msra.mxu0 %v3259_v35  ;;  %3264 = vmatprep.subr.bf16.mxu1 %v3263_v22 }
 0x4d2   :  { %3272 = vmatprep.subr.bf16.mxu0 %v3271_v5  ;;  %3266 = vmatpush3.bf16.msra.mxu1 %v3263_v22 }
 0x535   :  { %v3012_v24 = vpop.f32.mrb[10].mxu1 }
 0x536   :  { %v902_v25 = vpop.f32.mrb[11].mxu1 }
 0x599   :  { %v3019_v36 = vpop.f32.mrb[12].mxu1 }
 0x59a   :  { %1158 = vrot.lane.b32.xlu1 %v3019_v36, %s3571_s28  ;;  %v983_v37 = vpop.f32.mrb[13].mxu1  ;;  %v1301_v36 = vrot.slane %v3679_v32, %v3705_v62 }
 0x59f   :  { %v3026_v38 = vpop.f32.mrb[4].mxu0 }
 0x5a0   :  { %v1064_v39 = vpop.f32.mrb[5].mxu0  ;;  %1166 = vrot.lane.b32.xlu1 %v3026_v38, %s3575_s2 }
 0x5a1   :  { %1164 = vrot.lane.b32.xlu0 %v1064_v39, %s3575_s2  ;;  %v1307_v39 = vrot.slane %v3679_v32, %v3804_v55 }
 0x5a2   :  { %v3033_v40 = vpop.f32.mrb[14].mxu1 }
 0x5a3   :  { %v1145_v41 = vpop.f32.mrb[15].mxu1 }
 0x5a4   :  { %1156 = vrot.lane.b32.xlu1 %v983_v37, %s3571_s28 }
 0x5a5   :  { %1172 = vrot.lane.b32.xlu0 %v1145_v41, %s3576_s25 }
 0x5a8   :  { %1174 = vrot.lane.b32.xlu1 %v3033_v40, %s3576_s25 }
 0x60c   :  { %v1159_v42 = vpop.permute.xlu1 %1158 }
 0x60d   :  { %v1179_v49 = vsel %vm408_vm1, %v3012_v24, %v1159_v42  ;;  %v1316_v24 = vld [vmem:[#allocation2 + $0x98] sm:$0xff] }
 0x612   :  { %v1167_v43 = vpop.permute.xlu1 %1166 }
 0x613   :  { %v1165_v44 = vpop.permute.xlu0 %1164  ;;  %v1181_v51 = vsel %vm741_vm3, %v1179_v49, %v1167_v43 }
 0x616   :  { %v1157_v45 = vpop.permute.xlu1 %1156 }
 0x617   :  { %v1178_v46 = vsel %vm408_vm1, %v902_v25, %v1157_v45  ;;  %v1173_v47 = vpop.permute.xlu0 %1172  ;;  %v3267_v25 = vpack.c.bf16 %v1316_v24, %v1315_v23 }
 0x618   :  { %v1180_v48 = vsel %vm741_vm3, %v1178_v46, %v1165_v44  ;;  %v3840_v46 = vld [vmem:[%s4062_s6 + $0x4] sm:$0xf] }
 0x619   :  { %v1183_v50 = vsel %vm1182_vm4, %v1180_v48, %v1173_v47  ;;  %3268 = vmatprep.subr.bf16.mxu1 %v3267_v25  ;;  %v1419_v32 = vrot.slane %v3840_v46, %v3682_v33  ;;  %v1322_v33 = vld [vmem:[#allocation2 + $0xc8] sm:$0xff] }
 0x61a   :  { %v1175_v52 = vpop.permute.xlu1 %1174  ;;  %3042 = vmatprep.mubr.msk.f32.mxu0 %vm58_vm0, %v1183_v50  ;;  %3270 = vmatpush3.bf16.msra.mxu1 %v3267_v25 }
 0x61b   :  { %v1184_v54 = vsel %vm1182_vm4, %v1181_v51, %v1175_v52 }
 0x61c   :  { %3043 = vmatmul.mubr.msk.f32.vlgmr.msra.gmra.mrb[6].mxu0 %vm58_vm0, %v1184_v54  ;;  %v1321_v54 = vld [vmem:[#allocation2 + $0xc0] sm:$0xff] }
 0x61d   :  { %3274 = vmatpush3.bf16.msra.mxu0 %v3271_v5  ;;  %3064 = vmatprep.mubr.msk.f32.mxu0 %vm58_vm0, %v55_v18 }
 0x61e   :  { %3276 = vmatprep.subr.bf16.mxu0 %v3275_v17 }
 0x621   :  { %3278 = vmatpush3.bf16.msra.mxu0 %v3275_v17 }
 0x624   :  { %3065 = vmatmul.mubr.msk.f32.vlgmr.msra.gmra.mrb[8].mxu0 %vm58_vm0, %v56_v19 }
 0x6ef   :  { %v3044_v57 = vpop.f32.mrb[6].mxu0 }
 0x6f0   :  { %v1267_v58 = vadd.f32 %v3044_v57, %v1188_v56  ;;  %v1261_v59 = vpop.f32.mrb[7].mxu0  ;;  %v3279_v57 = vpack.c.bf16 %v1322_v33, %v1321_v54 }
 0x6f1   :  { %v1262_v60 = vadd.f32 %v1261_v59, %v1188_v56  ;;  %v1323_v56 = vld [vmem:[#allocation2 + $0xd0] sm:$0xff] }
 0x6f2   :  { %v3809_v12 = vadd.f32 %v1267_v58, %v3661_v1  ;;  %v1324_v58 = vld [vmem:[#allocation2 + $0xd8] sm:$0xff]  ;;  %3280 = vmatprep.subr.bf16.mxu1 %v3279_v57 }
 0x6f3   :  { %v3812_v61 = vadd.f32 %v1262_v60, %v3656_v0  ;;  %v3283_v59 = vpack.c.bf16 %v1324_v58, %v1323_v56 }
 0x6f4   :  { %v1275_v63 = vsel %vm58_vm0, %v3809_v12, 0.0 }
 0x6f5   :  { %1276 = vadd.xlane.f32.xlu1 %v1275_v63  ;;  %v1272_v2 = vsel %vm58_vm0, %v3812_v61, 0.0 }
 0x6f6   :  { %1273 = vadd.xlane.f32.xlu0 %v1272_v2 }
 0x6f7   :  { %v3066_v47 = vpop.f32.mrb[8].mxu0 }
 0x6f8   :  { %v1498_v48 = vadd.f32 %v3066_v47, %v1419_v32  ;;  %v1492_v49 = vpop.f32.mrb[9].mxu0 }
 0x6f9   :  { %v1493_v50 = vadd.f32 %v1492_v49, %v1419_v32 }
 0x6fb   :  { %v3419_v51 = vpack.i.bf16 %v1498_v48, %v1493_v50  ;;  %v3287_v52 = vpack.c.bf16 %v1498_v48, %v1493_v50 }
 0x6fd   :  { %3289 = vmatprep.subr.msk.bf16.mxu0 %vm3709_vm2, %v3287_v52 }
 0x6fe   :  { %3292 = vmatpush3.bf16.xpose.msk.msra.mxu0 %vm3709_vm2, %v3287_v52 }
 0x706   :  { %3420 = vrot.lane.b32.xlu1 %v3419_v51, %s3572_s18 }
 0x70a   :  { %3425 = vrot.lane.b32.xlu1 %v3419_v51, %s3574_s20 }
 0x782   :  { %v1277_v6 = vpop.xlane.xlu1 %1276 }
 0x783   :  { %v1279_v7 = vmul.f32 0.03125, %v1277_v6  ;;  %v1274_v1 = vpop.xlane.xlu0 %1273 }
 0x784   :  { %v1278_v8 = vmul.f32 0.03125, %v1274_v1 }
 0x785   :  { %v1281_v0 = vsub.f32 %v3809_v12, %v1279_v7 }
 0x786   :  { %v1280_v9 = vsub.f32 %v3812_v61, %v1278_v8  ;;  %v3421_v60 = vpop.permute.xlu1 %3420 }
 0x787   :  { %v1283_v13 = vmul.f32 %v1281_v0, %v1281_v0  ;;  %v3423_v2 = vunpack.i.h.bf16 %v3421_v60  ;;  %v3422_v3 = vunpack.i.l.bf16 %v3421_v60 }
 0x788   :  { %v1282_v10 = vmul.f32 %v1280_v9, %v1280_v9 }
 0x789   :  { %v1287_v14 = vsel %vm58_vm0, %v1283_v13, 0.0  ;;  %v3299_v6 = vpack.c.bf16 %v3423_v2, %v3422_v3 }
 0x78a   :  { %v1284_v11 = vsel %vm58_vm0, %v1282_v10, 0.0  ;;  %v3426_v1 = vpop.permute.xlu1 %3425  ;;  %v1334_v10 = vrot.slane %v3840_v46, %v3674_v31  ;;  %v1504_v31 = vrot.slane %v3840_v46, %v3705_v62 }
 0x78b   :  { %1285 = vadd.xlane.f32.xlu0 %v1284_v11  ;;  %v3428_v8 = vunpack.i.h.bf16 %v3426_v1  ;;  %3301 = vmatprep.subr.msk.bf16.mxu0 %vm3709_vm2, %v3299_v6 }
 0x78f   :  { %1288 = vadd.xlane.f32.xlu0 %v1287_v14 }
 0x7a5   :  { %3415 = vrot.lane.b32.xlu0 %v3419_v51, %s3573_s19 }
 0x818   :  { %v1286_v26 = vpop.xlane.xlu0 %1285 }
 0x819   :  { %v1290_v27 = vmul.f32 0.03125, %v1286_v26  ;;  %v1311_v26 = vld [vmem:[%s4059_s3 + $0x8] sm:$0xff] }
 0x81b   :  { %v1292_v28 = vadd.f32 1e-06, %v1290_v27 }
 0x81c   :  { %v1289_v30 = vpop.xlane.xlu0 %1288 }
 0x81d   :  { %3480 = vrsqrt.f32 %v1292_v28  ;;  %v1291_v34 = vmul.f32 0.03125, %v1289_v30 }
 0x81f   :  { %v1293_v35 = vadd.f32 1e-06, %v1291_v34 }
 0x820   :  { %v3416_v63 = vpop.permute.xlu0 %3415 }
 0x821   :  { %3482 = vrsqrt.f32 %v1293_v35  ;;  %v3418_v53 = vunpack.i.h.bf16 %v3416_v63  ;;  %v3417_v5 = vunpack.i.l.bf16 %v3416_v63 }
 0x823   :  { %v3293_v7 = vpack.c.bf16 %v3418_v53, %v3417_v5 }
 0x827   :  { %v3481_v37 = vpop.eup %3480 }
 0x828   :  { %v1296_v38 = vmul.f32 %v3481_v37, %v1280_v9 }
 0x82a   :  { %v1302_v40 = vmul.f32 %v1301_v36, %v1296_v38 }
 0x82b   :  { %v3483_v41 = vpop.eup %3482 }
 0x82c   :  { %v1297_v42 = vmul.f32 %v3483_v41, %v1281_v0  ;;  %v1308_v43 = vadd.f32 %v1307_v39, %v1302_v40  ;;  %v3427_v0 = vunpack.i.l.bf16 %v3426_v1 }
 0x82e   :  { %v1303_v44 = vmul.f32 %v1301_v36, %v1297_v42  ;;  %3053 = vmatprep.mubr.msk.f32.mxu1 %vm58_vm0, %v1308_v43  ;;  %v3305_v9 = vpack.c.bf16 %v3428_v8, %v3427_v0 }
 0x830   :  { %v1309_v45 = vadd.f32 %v1307_v39, %v1303_v44 }
 0x832   :  { %3054 = vmatmul.mubr.msk.f32.vlgmr.msra.gmra.mrb[16].mxu1 %vm58_vm0, %v1309_v45 }
 0x833   :  { %3075 = vmatprep.mubr.msk.f32.mxu1 %vm58_vm0, %v55_v18  ;;  %3282 = vmatpush3.bf16.msra.mxu1 %v3279_v57 }
 0x834   :  { %3284 = vmatprep.subr.bf16.mxu1 %v3283_v59 }
 0x837   :  { %3286 = vmatpush3.bf16.msra.mxu1 %v3283_v59 }
 0x838   :  { %3295 = vmatprep.subr.msk.bf16.mxu1 %vm3709_vm2, %v3293_v7 }
 0x83a   :  { %3076 = vmatmul.mubr.msk.f32.vlgmr.msra.gmra.mrb[18].mxu1 %vm58_vm0, %v56_v19 }
 0x840   :  { %3298 = vmatpush3.bf16.xpose.msk.msra.mxu1 %vm3709_vm2, %v3293_v7 }
 0x841   :  { %3307 = vmatprep.subr.msk.bf16.mxu1 %vm3709_vm2, %v3305_v9 }
 0x905   :  { %v3055_v11 = vpop.f32.mrb[16].mxu1 }
 0x906   :  { %v1413_v13 = vadd.f32 %v3055_v11, %v1334_v10  ;;  %v1407_v14 = vpop.f32.mrb[17].mxu1 }
 0x907   :  { %v1408_v15 = vadd.f32 %v1407_v14, %v1334_v10 }
 0x908   :  { %1584 = vrot.lane.b32.xlu0 %v1413_v13, %s3573_s19 }
 0x909   :  { %1582 = vrot.lane.b32.xlu1 %v1408_v15, %s3573_s19  ;;  %3082 = vmatprep.mubr.msk.f32.mxu0 %vm408_vm1, %v1408_v15 }
 0x90a   :  { %3083 = vmatmul.mubr.msk.f32.vlgmr.msra.gmra.mrb[10].mxu0 %vm408_vm1, %v1413_v13 }
 0x90b   :  { %3304 = vmatpush3.bf16.xpose.msk.msra.mxu0 %vm3709_vm2, %v3299_v6 }
 0x90c   :  { %1588 = vrot.lane.b32.xlu0 %v1413_v13, %s3572_s18 }
 0x90d   :  { %1586 = vrot.lane.b32.xlu1 %v1408_v15, %s3572_s18  ;;  %v3077_v16 = vpop.f32.mrb[18].mxu1 }
 0x90e   :  { %v1577_v17 = vadd.f32 %v3077_v16, %v1504_v31  ;;  %v1571_v18 = vpop.f32.mrb[19].mxu1 }
 0x90f   :  { %v1572_v19 = vadd.f32 %v1571_v18, %v1504_v31 }
 0x910   :  { %1592 = vrot.lane.b32.xlu0 %v1413_v13, %s3574_s20 }
 0x911   :  { %1590 = vrot.lane.b32.xlu1 %v1408_v15, %s3574_s20  ;;  %v3311_v20 = vpack.c.bf16 %v1577_v17, %v1572_v19  ;;  %v3896_v56 = vpack.i.bf16 %v1577_v17, %v1572_v19 }
 0x913   :  { %3312 = vmatprep.subr.bf16.mxu0 %v3311_v20 }
 0x97a   :  { %v1585_v21 = vpop.permute.xlu0 %1584 }
 0x97b   :  { %v1583_v22 = vpop.permute.xlu1 %1582 }
 0x97c   :  { %3089 = vmatprep.mubr.msk.f32.mxu1 %vm408_vm1, %v1583_v22 }
 0x97d   :  { %3090 = vmatmul.mubr.msk.f32.vlgmr.msra.gmra.mrb[20].mxu1 %vm408_vm1, %v1585_v21 }
 0x97e   :  { %3310 = vmatpush3.bf16.xpose.msk.msra.mxu1 %vm3709_vm2, %v3305_v9  ;;  %v1589_v23 = vpop.permute.xlu0 %1588 }
 0x97f   :  { %v1587_v24 = vpop.permute.xlu1 %1586 }
 0x980   :  { %3096 = vmatprep.mubr.msk.f32.mxu0 %vm408_vm1, %v1587_v24 }
 0x981   :  { %3097 = vmatmul.mubr.msk.f32.vlgmr.msra.gmra.mrb[12].mxu0 %vm408_vm1, %v1589_v23 }
 0x982   :  { %3314 = vmatpush3.bf16.msra.mxu0 %v3311_v20  ;;  %v1593_v25 = vpop.permute.xlu0 %1592 }
 0x983   :  { %v1591_v62 = vpop.permute.xlu1 %1590 }
 0x984   :  { %3103 = vmatprep.mubr.msk.f32.mxu1 %vm408_vm1, %v1591_v62 }
 0x985   :  { %3104 = vmatmul.mubr.msk.f32.vlgmr.msra.gmra.mrb[22].mxu1 %vm408_vm1, %v1593_v25 }
 0x9dd   :  { %v3084_v27 = vpop.f32.mrb[10].mxu0 }
 0x9de   :  { %v1708_v28 = vadd.f32 %v3084_v27, %v1311_v26  ;;  %v1702_v30 = vpop.f32.mrb[11].mxu0 }
 0x9df   :  { %v1703_v34 = vadd.f32 %v1702_v30, %v1310_v4 }
 0x9e0   :  { %v1963_v35 = vsel %vm741_vm3, %v1708_v28, -inf }
 0x9e1   :  { %1964 = vmax.xlane.f32.xlu0 %v1963_v35  ;;  %v1960_v36 = vsel %vm741_vm3, %v1703_v34, -inf }
 0x9e2   :  { %1961 = vmax.xlane.f32.xlu1 %v1960_v36 }
 0xa50   :  { %v3091_v37 = vpop.f32.mrb[20].mxu1 }
 0xa51   :  { %v1791_v38 = vadd.f32 %v3091_v37, %v1311_v26  ;;  %v1785_v39 = vpop.f32.mrb[21].mxu1 }
 0xa52   :  { %v1786_v40 = vadd.f32 %v1785_v39, %v1310_v4 }
 0xa53   :  { %v1969_v41 = vsel %vm741_vm3, %v1791_v38, -inf }
 0xa54   :  { %v3098_v42 = vpop.f32.mrb[12].mxu0  ;;  %1970 = vmax.xlane.f32.xlu0 %v1969_v41  ;;  %v1966_v32 = vsel %vm741_vm3, %v1786_v40, -inf }
 0xa55   :  { %v1868_v43 = vpop.f32.mrb[13].mxu0  ;;  %v1874_v45 = vadd.f32 %v3098_v42, %v1311_v26 }
 0xa56   :  { %v1869_v44 = vadd.f32 %v1868_v43, %v1310_v4 }
 0xa57   :  { %v1975_v52 = vsel %vm741_vm3, %v1874_v45, -inf }
 0xa58   :  { %v3105_v47 = vpop.f32.mrb[22].mxu1  ;;  %1967 = vmax.xlane.f32.xlu0 %v1966_v32  ;;  %v1972_v48 = vsel %vm741_vm3, %v1869_v44, -inf }
 0xa59   :  { %1973 = vmax.xlane.f32.xlu1 %v1972_v48  ;;  %v1951_v49 = vpop.f32.mrb[23].mxu1  ;;  %v1957_v51 = vadd.f32 %v3105_v47, %v1311_v26 }
 0xa5a   :  { %v1952_v50 = vadd.f32 %v1951_v49, %v1310_v4 }
 0xa5b   :  { %v1981_v33 = vsel %vm741_vm3, %v1957_v51, -inf }
 0xa5c   :  { %1976 = vmax.xlane.f32.xlu0 %v1975_v52  ;;  %v1978_v54 = vsel %vm741_vm3, %v1952_v50, -inf }
 0xa5d   :  { %1979 = vmax.xlane.f32.xlu1 %v1978_v54 }
 0xa60   :  { %1982 = vmax.xlane.f32.xlu0 %v1981_v33 }
 0xa6e   :  { %v1965_v57 = vpop.xlane.xlu0 %1964  ;;  %3430 = vrot.lane.b32.xlu1 %v3896_v56, %s3573_s19 }
 0xa6f   :  { %v1985_v58 = vsub.f32 %v1708_v28, %v1965_v57  ;;  %v1962_v60 = vpop.xlane.xlu1 %1961 }
 0xa70   :  { %v1984_v63 = vsub.f32 %v1703_v34, %v1962_v60 }
 0xa71   :  { %v1994_v59 = vmul.f32 1.442695, %v1985_v58 }
 0xa72   :  { %v1992_v53 = vmul.f32 1.442695, %v1984_v63 }
 0xa73   :  { %3484 = vpow2.f32 %v1994_v59 }
 0xa74   :  { %3486 = vpow2.f32 %v1992_v53 }
 0xa7d   :  { %v3900_v2 = vpop.eup %3484 }
 0xa7e   :  { %v2011_v3 = vsel %vm741_vm3, %v3900_v2, 0.0  ;;  %v3487_v5 = vpop.eup %3486 }
 0xa7f   :  { %2012 = vadd.xlane.f32.xlu0 %v2011_v3  ;;  %v2008_v6 = vsel %vm741_vm3, %v3487_v5, 0.0 }
 0xa92   :  { %2009 = vadd.xlane.f32.xlu1 %v2008_v6 }
 0xae1   :  { %v1971_v7 = vpop.xlane.xlu0 %1970 }
 0xae2   :  { %v1987_v1 = vsub.f32 %v1791_v38, %v1971_v7 }
 0xae4   :  { %v1998_v8 = vmul.f32 1.442695, %v1987_v1 }
 0xae5   :  { %v1968_v0 = vpop.xlane.xlu0 %1967 }
 0xae6   :  { %3488 = vpow2.f32 %v1998_v8  ;;  %v1986_v9 = vsub.f32 %v1786_v40, %v1968_v0  ;;  %v1974_v10 = vpop.xlane.xlu1 %1973 }
 0xae7   :  { %v1988_v11 = vsub.f32 %v1869_v44, %v1974_v10 }
 0xae8   :  { %v1996_v13 = vmul.f32 1.442695, %v1986_v9 }
 0xae9   :  { %v2000_v14 = vmul.f32 1.442695, %v1988_v11  ;;  %v1977_v15 = vpop.xlane.xlu0 %1976 }
 0xaea   :  { %3490 = vpow2.f32 %v1996_v13  ;;  %v1989_v31 = vsub.f32 %v1874_v45, %v1977_v15  ;;  %v1980_v16 = vpop.xlane.xlu1 %1979  ;;  %v1325_v15 = vld [vmem:[#allocation2 + $0xe0] sm:$0xff] }
 0xaeb   :  { %v1990_v17 = vsub.f32 %v1952_v50, %v1980_v16  ;;  %3492 = vpow2.f32 %v2000_v14 }
 0xaec   :  { %v2002_v18 = vmul.f32 1.442695, %v1989_v31  ;;  %v1326_v31 = vld [vmem:[#allocation2 + $0xe8] sm:$0xff] }
 0xaed   :  { %v2004_v19 = vmul.f32 1.442695, %v1990_v17  ;;  %v1983_v20 = vpop.xlane.xlu0 %1982  ;;  %v3327_v16 = vpack.c.bf16 %v1326_v31, %v1325_v15  ;;  %v1327_v17 = vld [vmem:[#allocation2 + $0xf0] sm:$0xff] }
 0xaee   :  { %3494 = vpow2.f32 %v2002_v18  ;;  %v1991_v21 = vsub.f32 %v1957_v51, %v1983_v20  ;;  %v3431_v22 = vpop.permute.xlu1 %3430  ;;  %v1328_v18 = vld [vmem:[#allocation2 + $0xf8] sm:$0xff]  ;;  %v2631_v31 = vld [vmem:[%s4065_s9 + $0x50] sm:$0xff] }
 0xaef   :  { %v3433_v23 = vunpack.i.h.bf16 %v3431_v22  ;;  %v3432_v24 = vunpack.i.l.bf16 %v3431_v22  ;;  %3496 = vpow2.f32 %v2004_v19  ;;  %v3331_v19 = vpack.c.bf16 %v1328_v18, %v1327_v17  ;;  %v2633_v18 = vld [vmem:[%s4065_s9 + $0x60] sm:$0xff] }
 0xaf0   :  { %v3489_v62 = vpop.eup %3488  ;;  %v2006_v25 = vmul.f32 1.442695, %v1991_v21 }
 0xaf1   :  { %v3315_v26 = vpack.c.bf16 %v3433_v23, %v3432_v24  ;;  %v2017_v4 = vsel %vm741_vm3, %v3489_v62, 0.0 }
 0xaf2   :  { %3498 = vpow2.f32 %v2006_v25  ;;  %2018 = vadd.xlane.f32.xlu0 %v2017_v4 }
 0xaf3   :  { %3316 = vmatprep.subr.bf16.mxu1 %v3315_v26 }
 0xaf4   :  { %v3491_v27 = vpop.eup %3490  ;;  %3318 = vmatpush3.bf16.msra.mxu1 %v3315_v26 }
 0xaf5   :  { %v2014_v28 = vsel %vm741_vm3, %v3491_v27, 0.0  ;;  %v3493_v30 = vpop.eup %3492 }
 0xaf6   :  { %2015 = vadd.xlane.f32.xlu1 %v2014_v28  ;;  %v2020_v35 = vsel %vm741_vm3, %v3493_v30, 0.0 }
 0xaf8   :  { %v3495_v34 = vpop.eup %3494 }
 0xaf9   :  { %v2023_v36 = vsel %vm741_vm3, %v3495_v34, 0.0  ;;  %v3497_v37 = vpop.eup %3496 }
 0xafa   :  { %2021 = vadd.xlane.f32.xlu1 %v2020_v35  ;;  %2024 = vadd.xlane.f32.xlu0 %v2023_v36  ;;  %v2026_v39 = vsel %vm741_vm3, %v3497_v37, 0.0 }
 0xafc   :  { %v3499_v38 = vpop.eup %3498 }
 0xafd   :  { %v2029_v40 = vsel %vm741_vm3, %v3499_v38, 0.0 }
 0xafe   :  { %2027 = vadd.xlane.f32.xlu1 %v2026_v39  ;;  %2030 = vadd.xlane.f32.xlu0 %v2029_v40  ;;  %v2405_v40 = vrot.slane %v3840_v46, %v3804_v55 }
 0xb0c   :  { %v2013_v41 = vpop.xlane.xlu0 %2012 }
 0xb0d   :  { %3500 = vrcp.f32 %v2013_v41 }
 0xb0f   :  { %3440 = vrot.lane.b32.xlu1 %v3896_v56, %s3574_s20 }
 0xb14   :  { %3435 = vrot.lane.b32.xlu0 %v3896_v56, %s3572_s18 }
 0xb17   :  { %v3501_v43 = vpop.eup %3500 }
 0xb18   :  { %v2041_v32 = vmul.f32 %v3501_v43, %v3900_v2 }
 0xb1f   :  { %v2010_v42 = vpop.xlane.xlu1 %2009 }
 0xb20   :  { %3502 = vrcp.f32 %v2010_v42 }
 0xb2a   :  { %v3503_v44 = vpop.eup %3502 }
 0xb2b   :  { %v2040_v45 = vmul.f32 %v3503_v44, %v3487_v5 }
 0xb2d   :  { %3110 = vmatprep.mubr.msk.f32.mxu0 %vm741_vm3, %v2040_v45 }
 0xb2e   :  { %3111 = vmatmul.mubr.msk.f32.vlgmr.msra.gmra.mrb[14].mxu0 %vm741_vm3, %v2041_v32 }
 0xb7f   :  { %v2019_v47 = vpop.xlane.xlu0 %2018 }
 0xb80   :  { %3504 = vrcp.f32 %v2019_v47 }
 0xb83   :  { %v2016_v48 = vpop.xlane.xlu1 %2015 }
 0xb84   :  { %3506 = vrcp.f32 %v2016_v48 }
 0xb87   :  { %v2022_v49 = vpop.xlane.xlu1 %2021  ;;  %v2025_v50 = vpop.xlane.xlu0 %2024 }
 0xb88   :  { %3508 = vrcp.f32 %v2022_v49 }
 0xb89   :  { %3510 = vrcp.f32 %v2025_v50 }
 0xb8a   :  { %v3505_v54 = vpop.eup %3504 }
 0xb8b   :  { %v2028_v51 = vpop.xlane.xlu1 %2027  ;;  %v2031_v52 = vpop.xlane.xlu0 %2030  ;;  %v2043_v56 = vmul.f32 %v3505_v54, %v3489_v62 }
 0xb8c   :  { %3512 = vrcp.f32 %v2028_v51 }
 0xb8d   :  { %3514 = vrcp.f32 %v2031_v52 }
 0xb8e   :  { %v3507_v33 = vpop.eup %3506 }
 0xb8f   :  { %v3441_v57 = vpop.permute.xlu1 %3440  ;;  %v3436_v58 = vpop.permute.xlu0 %3435  ;;  %v2042_v59 = vmul.f32 %v3507_v33, %v3491_v27 }
 0xb90   :  { %v3443_v60 = vunpack.i.h.bf16 %v3441_v57  ;;  %v3442_v63 = vunpack.i.l.bf16 %v3441_v57  ;;  %v3438_v2 = vunpack.i.h.bf16 %v3436_v58  ;;  %v3437_v3 = vunpack.i.l.bf16 %v3436_v58  ;;  %v2528_v57 = vld [vmem:[%s4063_s7 + $0x8] sm:$0xff] }
 0xb91   :  { %3117 = vmatprep.mubr.msk.f32.mxu1 %vm741_vm3, %v2042_v59  ;;  %v2529_v59 = vld [vmem:[%s4063_s7 + $0x10] sm:$0xff] }
 0xb92   :  { %v3509_v53 = vpop.eup %3508  ;;  %v3323_v5 = vpack.c.bf16 %v3443_v60, %v3442_v63  ;;  %v3319_v6 = vpack.c.bf16 %v3438_v2, %v3437_v3  ;;  %3118 = vmatmul.mubr.msk.f32.vlgmr.msra.gmra.mrb[24].mxu1 %vm741_vm3, %v2043_v56  ;;  %v2527_v56 = vld [vmem:[%s4063_s7] sm:$0xff]  ;;  %v2530_v60 = vld [vmem:[%s4063_s7 + $0x18] sm:$0xff]  ;;  %v2622_v3 = vld [vmem:[%s4065_s9 + $0x8] sm:$0xff] }
 0xb93   :  { %v3511_v7 = vpop.eup %3510  ;;  %v2044_v1 = vmul.f32 %v3509_v53, %v3493_v30  ;;  %v3335_v58 = vpack.c.bf16 %v2528_v57, %v2527_v56  ;;  %v3339_v63 = vpack.c.bf16 %v2530_v60, %v2529_v59  ;;  %v2621_v2 = vld [vmem:[%s4065_s9] sm:$0xff]  ;;  %v2623_v53 = vld [vmem:[%s4065_s9 + $0x10] sm:$0xff] }
 0xb94   :  { %3320 = vmatprep.subr.bf16.mxu0 %v3319_v6  ;;  %3324 = vmatprep.subr.bf16.mxu1 %v3323_v5  ;;  %v2045_v0 = vmul.f32 %v3511_v7, %v3495_v34 }
 0xb95   :  { %3322 = vmatpush3.bf16.msra.mxu0 %v3319_v6  ;;  %3124 = vmatprep.mubr.msk.f32.mxu0 %vm741_vm3, %v2044_v1  ;;  %v2624_v6 = vld [vmem:[%s4065_s9 + $0x18] sm:$0xff]  ;;  %v2625_v1 = vld [vmem:[%s4065_s9 + $0x20] sm:$0xff] }
 0xb96   :  { %v3513_v8 = vpop.eup %3512  ;;  %3326 = vmatpush3.bf16.msra.mxu1 %v3323_v5  ;;  %3328 = vmatprep.subr.bf16.mxu0 %v3327_v16  ;;  %v3343_v5 = vpack.c.bf16 %v2622_v3, %v2621_v2  ;;  %v3347_v7 = vpack.c.bf16 %v2624_v6, %v2623_v53 }
 0xb97   :  { %v3515_v9 = vpop.eup %3514  ;;  %v2046_v10 = vmul.f32 %v3513_v8, %v3497_v37  ;;  %3336 = vmatprep.subr.bf16.mxu1 %v3335_v58  ;;  %v2626_v8 = vld [vmem:[%s4065_s9 + $0x28] sm:$0xff] }
 0xb98   :  { %v2047_v11 = vmul.f32 %v3515_v9, %v3499_v38  ;;  %3125 = vmatmul.mubr.msk.f32.vlgmr.msra.gmra.mrb[16].mxu0 %vm741_vm3, %v2045_v0  ;;  %v3351_v0 = vpack.c.bf16 %v2626_v8, %v2625_v1  ;;  %v2627_v9 = vld [vmem:[%s4065_s9 + $0x30] sm:$0xff] }
 0xb99   :  { %3131 = vmatprep.mubr.msk.f32.mxu1 %vm741_vm3, %v2046_v10  ;;  %3330 = vmatpush3.bf16.msra.mxu0 %v3327_v16  ;;  %v2628_v10 = vld [vmem:[%s4065_s9 + $0x38] sm:$0xff] }
 0xb9a   :  { %3132 = vmatmul.mubr.msk.f32.vlgmr.msra.gmra.mrb[26].mxu1 %vm741_vm3, %v2047_v11  ;;  %3332 = vmatprep.subr.bf16.mxu0 %v3331_v19  ;;  %v3355_v11 = vpack.c.bf16 %v2628_v10, %v2627_v9  ;;  %v2632_v16 = vld [vmem:[%s4065_s9 + $0x58] sm:$0xff] }
 0xb9b   :  { %3338 = vmatpush3.bf16.msra.mxu1 %v3335_v58  ;;  %v3363_v17 = vpack.c.bf16 %v2632_v16, %v2631_v31 }
 0xb9c   :  { %3340 = vmatprep.subr.bf16.mxu1 %v3339_v63 }
 0xb9d   :  { %3334 = vmatpush3.bf16.msra.mxu0 %v3331_v19  ;;  %v2634_v19 = vld [vmem:[%s4065_s9 + $0x68] sm:$0xff] }
 0xb9e   :  { %3344 = vmatprep.subr.bf16.mxu0 %v3343_v5 }
 0xb9f   :  { %3342 = vmatpush3.bf16.msra.mxu1 %v3339_v63 }
 0xc01   :  { %v3112_v13 = vpop.f32.mrb[14].mxu0 }
 0xc02   :  { %v2120_v14 = vpop.f32.mrb[15].mxu0 }
 0xc65   :  { %v3119_v20 = vpop.f32.mrb[24].mxu1 }
 0xc66   :  { %2376 = vrot.lane.b32.xlu1 %v3119_v20, %s3571_s28  ;;  %v2201_v21 = vpop.f32.mrb[25].mxu1  ;;  %v3367_v20 = vpack.c.bf16 %v2634_v19, %v2633_v18 }
 0xc6b   :  { %v3126_v22 = vpop.f32.mrb[16].mxu0 }
 0xc6c   :  { %2384 = vrot.lane.b32.xlu1 %v3126_v22, %s3575_s2  ;;  %v2282_v23 = vpop.f32.mrb[17].mxu0 }
 0xc6d   :  { %v3133_v24 = vpop.f32.mrb[26].mxu1  ;;  %2382 = vrot.lane.b32.xlu0 %v2282_v23, %s3575_s2 }
 0xc6e   :  { %v2363_v62 = vpop.f32.mrb[27].mxu1 }
 0xc70   :  { %2374 = vrot.lane.b32.xlu1 %v2201_v21, %s3571_s28 }
 0xc71   :  { %2390 = vrot.lane.b32.xlu0 %v2363_v62, %s3576_s25 }
 0xc74   :  { %2392 = vrot.lane.b32.xlu1 %v3133_v24, %s3576_s25 }
 0xcd8   :  { %v2377_v25 = vpop.permute.xlu1 %2376 }
 0xcd9   :  { %v2397_v35 = vsel %vm408_vm1, %v3112_v13, %v2377_v25  ;;  %v2629_v13 = vld [vmem:[%s4065_s9 + $0x40] sm:$0xff] }
 0xcde   :  { %v2385_v26 = vpop.permute.xlu1 %2384 }
 0xcdf   :  { %v2383_v4 = vpop.permute.xlu0 %2382  ;;  %v2399_v37 = vsel %vm741_vm3, %v2397_v35, %v2385_v26  ;;  %v2517_v26 = vsub.s32 4, %v3671_v29 }
 0xce2   :  { %v2375_v27 = vpop.permute.xlu1 %2374 }
 0xce3   :  { %v2396_v28 = vsel %vm408_vm1, %v2120_v14, %v2375_v27  ;;  %v2391_v30 = vpop.permute.xlu0 %2390  ;;  %v2630_v14 = vld [vmem:[%s4065_s9 + $0x48] sm:$0xff]  ;;  %v3520_v27 = vld [vmem:[%s4060_s4] sm:$0x3f] }
 0xce4   :  { %v2398_v34 = vsel %vm741_vm3, %v2396_v28, %v2383_v4  ;;  %v3359_v15 = vpack.c.bf16 %v2630_v14, %v2629_v13  ;;  %v2523_v4 = vsub.s32 5, %v3671_v29  ;;  %v2518_v28 = vrot.slane %v3520_v27, %v2517_v26  ;;  %v2635_v29 = vld [vmem:[%s4065_s9 + $0x70] sm:$0xff] }
 0xce5   :  { %v2400_v36 = vsel %vm1182_vm4, %v2398_v34, %v2391_v30 }
 0xce6   :  { %v2393_v38 = vpop.permute.xlu1 %2392  ;;  %3142 = vmatprep.mubr.msk.f32.mxu0 %vm58_vm0, %v2400_v36  ;;  %v2524_v35 = vrot.slane %v3520_v27, %v2523_v4 }
 0xce7   :  { %v2401_v39 = vsel %vm1182_vm4, %v2399_v37, %v2393_v38 }
 0xce8   :  { %3143 = vmatmul.mubr.msk.f32.vlgmr.msra.gmra.mrb[18].mxu0 %vm58_vm0, %v2401_v39 }
 0xce9   :  { %3346 = vmatpush3.bf16.msra.mxu0 %v3343_v5 }
 0xcea   :  { %3348 = vmatprep.subr.bf16.mxu0 %v3347_v7 }
 0xced   :  { %3350 = vmatpush3.bf16.msra.mxu0 %v3347_v7 }
 0xcee   :  { %3352 = vmatprep.subr.bf16.mxu0 %v3351_v0 }
 0xcf1   :  { %3354 = vmatpush3.bf16.msra.mxu0 %v3351_v0 }
 0xcf2   :  { %3356 = vmatprep.subr.bf16.mxu0 %v3355_v11 }
 0xcf5   :  { %3358 = vmatpush3.bf16.msra.mxu0 %v3355_v11 }
 0xcf6   :  { %3360 = vmatprep.subr.bf16.mxu0 %v3359_v15 }
 0xcf9   :  { %3362 = vmatpush3.bf16.msra.mxu0 %v3359_v15 }
 0xcfa   :  { %3364 = vmatprep.subr.bf16.mxu0 %v3363_v17 }
 0xcfd   :  { %3366 = vmatpush3.bf16.msra.mxu0 %v3363_v17 }
 0xcfe   :  { %3368 = vmatprep.subr.bf16.mxu0 %v3367_v20 }
 0xd01   :  { %3370 = vmatpush3.bf16.msra.mxu0 %v3367_v20 }
 0xdbb   :  { %v3144_v41 = vpop.f32.mrb[18].mxu0 }
 0xdbc   :  { %v2484_v42 = vadd.f32 %v3144_v41, %v2405_v40  ;;  %v2478_v43 = vpop.f32.mrb[19].mxu0 }
 0xdbd   :  { %v2479_v44 = vadd.f32 %v2478_v43, %v2405_v40 }
 0xdbe   :  { %v3941_v45 = vadd.f32 %v2484_v42, %v3809_v12  ;;  %v2636_v42 = vld [vmem:[%s4065_s9 + $0x78] sm:$0xff]  ;;  %s3577_s9 = smov [#allocation5]  }
 0xdbf   :  { %v3944_v32 = vadd.f32 %v2479_v44, %v3812_v61  ;;  %v3371_v43 = vpack.c.bf16 %v2636_v42, %v2635_v29  ;;  %v2805_v44 = vld [vmem:[%s4064_s8] ss:$0 sm:$0xff]  ;;  %s2728_s14 = sshll.u32 %s3577_s9, 4  ;;  %s2729_s14 = int_to_ptr.vmem [resolvable:$true] %s2728_s14 }
 0xdc0   :  { %v2492_v47 = vsel %vm58_vm0, %v3941_v45, 0.0  ;;  %s3543_s8 = scalar_lea.vmem %s2729_s14, 256  ;;  %p3548_p9 = scmp.lt.s32.totalorder %s2729_s14, %s2729_s14 }
 0xdc1   :  { %2493 = vadd.xlane.f32.xlu1 %v2492_v47  ;;  %v2489_v48 = vsel %vm58_vm0, %v3944_v32, 0.0  ;;  %3372 = vmatprep.subr.bf16.mxu0 %v3371_v43  ;;  %p3544_p8 = scmp.ne.s32.totalorder %s2729_s14, %s3543_s8  ;;  %p3549_p10 = scmp.lt.s32.totalorder %s3543_s8, %s3543_s8 }
 0xdc2   :  { %2490 = vadd.xlane.f32.xlu0 %v2489_v48  ;;  %3374 = vmatpush3.bf16.msra.mxu0 %v3371_v43 }
 0xdc3   :  { %p3550_p11 = por %p3549_p10, %p3548_p9 }
 0xdc5   :  { %p3551_p12 = pnand %p3550_p11, %p3544_p8 }
 0xe4e   :  { %v2494_v49 = vpop.xlane.xlu1 %2493 }
 0xe4f   :  { %v2496_v55 = vmul.f32 0.03125, %v2494_v49  ;;  %v2491_v46 = vpop.xlane.xlu0 %2490 }
 0xe50   :  { %v2495_v50 = vmul.f32 0.03125, %v2491_v46 }
 0xe51   :  { %v3951_v51 = vsub.f32 %v3941_v45, %v2496_v55 }
 0xe52   :  { %v3954_v12 = vsub.f32 %v3944_v32, %v2495_v50 }
 0xe53   :  { %v2500_v54 = vmul.f32 %v3951_v51, %v3951_v51 }
 0xe54   :  { %v2499_v61 = vmul.f32 %v3954_v12, %v3954_v12 }
 0xe55   :  { %v2504_v33 = vsel %vm58_vm0, %v2500_v54, 0.0 }
 0xe56   :  { %v2501_v52 = vsel %vm58_vm0, %v2499_v61, 0.0 }
 0xe57   :  { %2502 = vadd.xlane.f32.xlu0 %v2501_v52 }
 0xe5b   :  { %2505 = vadd.xlane.f32.xlu0 %v2504_v33 }
 0xee4   :  { %v2503_v21 = vpop.xlane.xlu0 %2502 }
 0xee5   :  { %v2507_v22 = vmul.f32 0.03125, %v2503_v21 }
 0xee7   :  { %v2509_v23 = vadd.f32 1e-06, %v2507_v22 }
 0xee8   :  { %v2506_v24 = vpop.xlane.xlu0 %2505 }
 0xee9   :  { %3516 = vrsqrt.f32 %v2509_v23  ;;  %v2508_v62 = vmul.f32 0.03125, %v2506_v24 }
 0xeeb   :  { %v2510_v25 = vadd.f32 1e-06, %v2508_v62 }
 0xeed   :  { %3518 = vrsqrt.f32 %v2510_v25 }
 0xef3   :  { %v3517_v30 = vpop.eup %3516 }
 0xef4   :  { %v2513_v34 = vmul.f32 %v3517_v30, %v3954_v12 }
 0xef6   :  { %v2519_v36 = vmul.f32 %v2518_v28, %v2513_v34 }
 0xef7   :  { %v3519_v37 = vpop.eup %3518 }
 0xef8   :  { %v2514_v38 = vmul.f32 %v3519_v37, %v3951_v51  ;;  %v2525_v39 = vadd.f32 %v2524_v35, %v2519_v36  ;;  %v2808_v51 = vld [vmem:[%s4066_s10] ss:$0 sm:$0xff] }
 0xefa   :  { %v2520_v40 = vmul.f32 %v2518_v28, %v2514_v38  ;;  %3153 = vmatprep.mubr.msk.f32.mxu1 %vm58_vm0, %v2525_v39 }
 0xefc   :  { %v2526_v41 = vadd.f32 %v2524_v35, %v2520_v40 }
 0xefe   :  { %3154 = vmatmul.mubr.msk.f32.vlgmr.msra.gmra.mrb[28].mxu1 %vm58_vm0, %v2526_v41 }
 0xfd1   :  { %v3155_v47 = vpop.f32.mrb[28].mxu1 }
 0xfd2   :  { %v2616_v48 = vadd.f32 %v3155_v47, %v2805_v44  ;;  %v2610_v49 = vpop.f32.mrb[29].mxu1 }
 0xfd3   :  { %v2611_v55 = vadd.f32 %v2805_v44, %v2610_v49 }
 0xfd4   :  { %v2620_v50 = vmax.f32 %v2616_v48, 0.0 }
 0xfd5   :  { %v2619_v46 = vmax.f32 %v2611_v55, 0.0 }
 0xfd7   :  { %3188 = vmatprep.mubr.f32.mxu0 %v2619_v46 }
 0xfd8   :  { %3189 = vmatmul.mubr.f32.vlgmr.msra.gmra.mrb[20].mxu0 %v2620_v50 }
0x10ab   :  { %v3190_v12 = vpop.f32.mrb[20].mxu0 }
0x10ac   :  { %v2716_v61 = vadd.f32 %v3190_v12, %v2808_v51  ;;  %v2710_v52 = vpop.f32.mrb[21].mxu0 }
0x10ad   :  { %v2711_v54 = vadd.f32 %v2808_v51, %v2710_v52 }
0x10ae   :  { %v2720_v33 = vadd.f32 %v2716_v61, %v3941_v45 }
0x10af   :  { %v2719_v56 = vadd.f32 %v2711_v54, %v3944_v32 }
0x10b0   :  { %2722 = vst.msk [vmem:[#allocation5 + $0x8] sm:$0xff] %vm58_vm0, %v2720_v33 }
0x10b1   :  { %2721 = vst.msk [vmem:[#allocation5] sm:$0xff] %vm58_vm0, %v2719_v56 }
0x10b2   :  { %3554 = shalt.err (!%p3551_p12)
}
0x10b3   :  { %s3555_s0 = scalar_lea.hbm %s4067_s11, 256 }
0x10b4   :  { %p3556_p13 = scmp.ne.s32.totalorder %s4067_s11, %s3555_s0  ;;  %p3559_p0 = scmp.lt.u32.totalorder %s3555_s0, %s4067_s11 }
0x10b6   :  { %p3561_p1 = pnand %p3559_p0, %p3556_p13 }
0x10b8   :  { %3564 = shalt.err (!%p3561_p1)
}
0x10b9   :  { %2734 = dma.vmem_to_hbm [thread:$0]  %s2729_s14, 256, %s4067_s11, [#allocation4], %s3570_s27, %s3570_s27, %s3571_s28  }
0x10ba   :  { %3567 = dma.done.wait [#allocation4], 256  }
0x10bb   :  { %3568 = vsyncadd [#allocation4], 4294967040 }
0x10bc   :  { %2738 = vsyncpa [#allocation3], 1 }
0x10bd   :  { %2739 = vsyncpa [#allocation4], 1 }

</bundles_post_ra>
